<compile_context>
chip_gen: v7x
topology: tpu7x:2x2x1
jax: 0.10.0
libtpu: 0.0.40
codegen_flags: <defaults>
</compile_context>

<pallas_src>
import math

import numpy as np

import jax
import jax.numpy as jnp
from jax.experimental import pallas as pl
from jax.experimental.pallas import tpu as pltpu


_MIB = 1 << 20
_L_MAX = 512                 # cap on Kup contraction width (bounds VMEM + dup-FLOPs)
_VMEM_BUDGET = 40 * _MIB     # per-step working budget, sized for v7x (64 MiB per TC)
_VMEM_LIMIT_CAP = 48 * _MIB  # never ask the compiler for more than ~48 MiB scoped VMEM


# ---------------------------------------------------------------------------
# Host-side setup glue
# ---------------------------------------------------------------------------
def _nearest_up2_operator(TH, W):
    """Kup (TH*W, 4*TH*W): flattened (row, w) tile -> flattened (row, dh, 2w+dw) tile.

    Right-multiplying a (C, TH*W) activation tile by Kup yields the 2x
    nearest-upsampled tile of shape (C, 2*TH * 2*W) in output row-major order.
    """
    idx = np.arange(W)
    rw = np.zeros((W, 2 * W), dtype=np.float32)          # width duplication
    rw[idx, 2 * idx] = 1.0
    rw[idx, 2 * idx + 1] = 1.0
    a = np.kron(np.ones((1, 2), dtype=np.float32), rw)   # (W, 4W): row duplicated (dh=0,1)
    return np.kron(np.eye(TH, dtype=np.float32), a)      # (TH*W, 4*TH*W)


def _pick_tiling(N, C_in, C_out, H, W, cd_bytes, od_bytes,
                 l_max=_L_MAX, vmem_budget=_VMEM_BUDGET):
    """Pick (H_pad, TH): largest row tile that is lane-aligned, VMEM-safe and megacore-friendly."""
    m = 128 // math.gcd(W, 128)                       # TH must be a multiple of m -> L % 128 == 0
    H_pad = H if H % m == 0 else ((H + m - 1) // m) * m
    cands = [th for th in range(m, H_pad + 1, m) if H_pad % th == 0]

    def vmem_est(th):
        L = th * W
        in_blk = C_in * L * cd_bytes
        out_blk = C_out * 4 * L * od_bytes
        kup = 4 * L * L * cd_bytes
        return 2 * in_blk + 2 * out_blk + 2 * kup     # conservative: assume Kup double-buffered

    fits = [th for th in cands if vmem_est(th) <= vmem_budget] or [cands[0]]
    small = [th for th in fits if th * W <= l_max] or fits        # bound the Kup operator
    multi = [th for th in small if N * (H_pad // th) >= 2] or small  # keep >=2 grid steps (2 TCs)
    return H_pad, max(multi)


# ---------------------------------------------------------------------------
# Pallas kernel: one grid step == (one batch element, TH input rows).
# ---------------------------------------------------------------------------
def upblock2_kernel(x_ref, w_ref, b_ref, up_ref, o_ref):
    # x_ref : (1, C_in, L)     TH input rows, flattened over (row, w); L = TH*W
    # w_ref : (C_out, C_in)    1x1 conv weight (compute dtype)
    # b_ref : (C_out, 1)       conv bias (f32)
    # up_ref: (L, 4L)          tile-local 0/1 nearest-upsample operator (compute dtype)
    # o_ref : (1, C_out, 4L)   2*TH output rows, flattened over (row, dh, ow)
    x = x_ref[0]                                                      # (C_in, L)
    y = jnp.dot(w_ref[...], x, preferred_element_type=jnp.float32)    # 1x1 conv -> f32 acc
    y = y + b_ref[...]                                                # bias at LOW resolution
    y = y.astype(up_ref.dtype)
    z = jnp.dot(y, up_ref[...], preferred_element_type=jnp.float32)   # exact 0/1 upsample
    o_ref[0] = z.astype(o_ref.dtype)


# ---------------------------------------------------------------------------
# Wrapper
# ---------------------------------------------------------------------------
def upblock2(x, weight, bias, *, compute_dtype=jnp.bfloat16, out_dtype=None):
    """x: (N, C_in, H, W); weight: (C_out, C_in[,1,1]); bias: (C_out,).

    Returns NCHW (N, C_out, 2H, 2W) in `out_dtype` (default: x.dtype).
    """
    N, C_in, H, W = x.shape
    weight = jnp.asarray(weight)
    w2 = weight.reshape(weight.shape[0], C_in)          # drop the 1x1 taps
    C_out = w2.shape[0]
    out_dtype = x.dtype if out_dtype is None else out_dtype

    cd_bytes = jnp.dtype(compute_dtype).itemsize
    od_bytes = jnp.dtype(out_dtype).itemsize
    H_pad, TH = _pick_tiling(N, C_in, C_out, H, W, cd_bytes, od_bytes)
    T = H_pad // TH                                      # row tiles per image
    L = TH * W                                           # input lanes per block (mult. of 128)

    kup_bytes = 4 * L * L * cd_bytes
    if kup_bytes > 16 * _MIB:
        # TODO(synk): add a width-tiled grid axis with a fixed (128, 512) upsample
        # operator for W >~ 2048; unreachable at the shapes this module targets.
        raise NotImplementedError(
            f"upsample operator would need {kup_bytes} bytes of VMEM; tile the width dim")

    kup = jnp.asarray(_nearest_up2_operator(TH, W), dtype=compute_dtype)   # (L, 4L)
    wq = w2.astype(compute_dtype)
    b2 = jnp.asarray(bias).reshape(C_out, 1).astype(jnp.float32)
    xc = x.astype(compute_dtype)
    if H_pad != H:
        xc = jnp.pad(xc, ((0, 0), (0, 0), (0, H_pad - H), (0, 0)))
    xf = xc.reshape(N, C_in, H_pad * W)                  # free reshape (merging adjacent dims)

    # VMEM sizing (v7x-safe) and advisory cost estimate (the op is HBM-writeback bound).
    in_blk = C_in * L * cd_bytes
    out_blk = C_out * 4 * L * od_bytes
    est = 2 * in_blk + 2 * out_blk + 2 * kup_bytes + C_out * (C_in * cd_bytes + 4)
    vmem_limit = int(min(_VMEM_LIMIT_CAP, max(2 * est, 32 * _MIB)))

    flops = 2 * N * H_pad * W * C_out * (C_in + 4 * L)
    bytes_accessed = (xf.size * cd_bytes + N * C_out * 4 * H_pad * W * od_bytes
                      + wq.size * cd_bytes + C_out * 4 + kup.size * cd_bytes)
    cost = pl.CostEstimate(flops=int(flops), transcendentals=0,
                           bytes_accessed=int(bytes_accessed))

    def build(single_buffer_consts):
        # Constants are DMA'd once (constant index map); request a single pipeline
        # buffer for them so Kup's VMEM footprint is not doubled.
        ck = dict(pipeline_mode=pl.Buffered(1)) if single_buffer_consts else {}
        return pl.pallas_call(
            upblock2_kernel,
            out_shape=jax.ShapeDtypeStruct((N, C_out, 4 * H_pad * W), out_dtype),
            grid_spec=pltpu.PrefetchScalarGridSpec(
                num_scalar_prefetch=0,
                grid=(N, T),
                in_specs=[
                    pl.BlockSpec((1, C_in, L), lambda n, t: (n, 0, t)),
                    pl.BlockSpec((C_out, C_in), lambda n, t: (0, 0), **ck),
                    pl.BlockSpec((C_out, 1), lambda n, t: (0, 0), **ck),
                    pl.BlockSpec((L, 4 * L), lambda n, t: (0, 0), **ck),
                ],
                out_specs=pl.BlockSpec((1, C_out, 4 * L), lambda n, t: (n, 0, t)),
            ),
            compiler_params=pltpu.CompilerParams(
                dimension_semantics=("parallel", "parallel"),
                vmem_limit_bytes=vmem_limit,
            ),
            cost_estimate=cost,
        )

    try:
        out_flat = build(True)(xf, wq, b2, kup)
    except Exception:
        # Fallback if this JAX build rejects pipeline_mode=pl.Buffered(1); Kup is capped
        # small enough (<= ~2-4 MB) that double-buffering it is still negligible.
        out_flat = build(False)(xf, wq, b2, kup)

    out = out_flat.reshape(N, C_out, 2 * H_pad, 2 * W)   # free reshape
    if H_pad != H:
        out = out[:, :, :2 * H, :]                       # drop padded rows
    return out


# ---------------------------------------------------------------------------
# Example run + pure-JAX reference checks
# ---------------------------------------------------------------------------
def _reference(x, weight, bias):
    C_out = weight.shape[0]
    C_in = x.shape[1]
    y = jnp.einsum("oc,nchw->nohw", weight.reshape(C_out, C_in), x,
                   precision=jax.lax.Precision.HIGHEST) + bias[None, :, None, None]
    return jnp.repeat(jnp.repeat(y, 2, axis=2), 2, axis=3)


if __name__ == "__main__":
    key = jax.random.PRNGKey(0)

    # --- Check 1: main shape, f32 compute / f32 output (tight tolerance) -------------
    N, C_in, C_out, H, W = 2, 4, 8, 16, 16
    kx, kw, kb, kx2, kw2, kb2 = jax.random.split(key, 6)
    x = jax.random.normal(kx, (N, C_in, H, W), dtype=jnp.float32)
    weight = 0.1 * jax.random.normal(kw, (C_out, C_in, 1, 1), dtype=jnp.float32)
    bias = 0.1 * jax.random.normal(kb, (C_out,), dtype=jnp.float32)
    ref = _reference(x, weight, bias)

    out_f32 = upblock2(x, weight, bias, compute_dtype=jnp.float32)
    jax.block_until_ready(out_f32)
    assert out_f32.shape == (N, C_out, 2 * H, 2 * W)
    assert out_f32.dtype == jnp.float32
    assert bool(jnp.allclose(out_f32, ref, rtol=1e-3, atol=1e-3))

    # --- Check 2: default fast path (bf16 compute, f32 output), loose tolerance ------
    out_fast = upblock2(x, weight, bias)          # compute_dtype=bf16 by default
    jax.block_until_ready(out_fast)
    assert bool(jnp.allclose(out_fast.astype(jnp.float32), ref, rtol=5e-2, atol=5e-2))

    # --- Check 3: non-128-aligned shape (padding path) + bf16 output -----------------
    N3, C_in3, C_out3, H3, W3 = 1, 3, 5, 6, 20
    x3 = jax.random.normal(kx2, (N3, C_in3, H3, W3), dtype=jnp.float32)
    w3 = 0.1 * jax.random.normal(kw2, (C_out3, C_in3, 1, 1), dtype=jnp.float32)
    b3 = 0.1 * jax.random.normal(kb2, (C_out3,), dtype=jnp.float32)
    ref3 = _reference(x3, w3, b3)

    out3 = upblock2(x3, w3, b3, out_dtype=jnp.bfloat16)
    jax.block_until_ready(out3)
    assert out3.shape == (N3, C_out3, 2 * H3, 2 * W3)
    assert out3.dtype == jnp.bfloat16
    assert bool(jnp.allclose(out3.astype(jnp.float32), ref3, rtol=1e-1, atol=5e-2))

    print("KERNEL_OK")
</pallas_src>

<mosaic_0001>
module attributes {stable_mosaic.version = 11 : i64} {
  func.func @upblock2_kernel(%arg0: i32, %arg1: i32, %arg2: memref<1x4x256xf32, #tpu.memory_space<vmem>>, %arg3: memref<8x4xf32, #tpu.memory_space<vmem>>, %arg4: memref<8x1xf32, #tpu.memory_space<vmem>>, %arg5: memref<256x1024xf32, #tpu.memory_space<vmem>>, %arg6: memref<1x8x1024xf32, #tpu.memory_space<vmem>>) attributes {dimension_semantics = [#tpu.dimension_semantics<parallel>, #tpu.dimension_semantics<parallel>], iteration_bounds = array<i64: 2, 1>, scalar_prefetch = 0 : i64, scratch_operands = 0 : i64, tpu.core_type = #tpu.core_type<tc>, window_params = [{transform_indices = @transform_0, window_bounds = array<i64: 1, 4, 256>}, {pipeline_mode = #tpu.pipeline_mode<synchronous>, transform_indices = @transform_1, window_bounds = array<i64: 8, 4>}, {pipeline_mode = #tpu.pipeline_mode<synchronous>, transform_indices = @transform_2, window_bounds = array<i64: 8, 1>}, {pipeline_mode = #tpu.pipeline_mode<synchronous>, transform_indices = @transform_3, window_bounds = array<i64: 256, 1024>}, {transform_indices = @transform_4, window_bounds = array<i64: 1, 8, 1024>}]} {
    %c0 = arith.constant 0 : index
    %c0_0 = arith.constant 0 : index
    %c0_1 = arith.constant 0 : index
    %0 = vector.load %arg2[%c0, %c0_0, %c0_1] : memref<1x4x256xf32, #tpu.memory_space<vmem>>, vector<1x4x256xf32>
    %1 = vector.shape_cast %0 : vector<1x4x256xf32> to vector<4x256xf32>
    %c0_2 = arith.constant 0 : index
    %c0_3 = arith.constant 0 : index
    %2 = vector.load %arg3[%c0_2, %c0_3] : memref<8x4xf32, #tpu.memory_space<vmem>>, vector<8x4xf32>
    %cst = arith.constant dense<0.000000e+00> : vector<8x256xf32>
    %3 = tpu.matmul %2, %1, %cst {dimension_numbers = #tpu.dot_dimension_numbers<[1], [0], [0], [1], [0, 0, 1, 1], [], []>} : vector<8x4xf32>, vector<4x256xf32>, vector<8x256xf32> -> vector<8x256xf32>
    %c0_4 = arith.constant 0 : index
    %c0_5 = arith.constant 0 : index
    %4 = vector.load %arg4[%c0_4, %c0_5] : memref<8x1xf32, #tpu.memory_space<vmem>>, vector<8x1xf32>
    %5 = vector.broadcast %4 : vector<8x1xf32> to vector<8x256xf32>
    %6 = arith.addf %3, %5 : vector<8x256xf32>
    %c0_6 = arith.constant 0 : index
    %c0_7 = arith.constant 0 : index
    %7 = vector.load %arg5[%c0_6, %c0_7] : memref<256x1024xf32, #tpu.memory_space<vmem>>, vector<256x1024xf32>
    %cst_8 = arith.constant dense<0.000000e+00> : vector<8x1024xf32>
    %8 = tpu.matmul %6, %7, %cst_8 {dimension_numbers = #tpu.dot_dimension_numbers<[1], [0], [0], [1], [0, 0, 1, 1], [], []>} : vector<8x256xf32>, vector<256x1024xf32>, vector<8x1024xf32> -> vector<8x1024xf32>
    %c0_9 = arith.constant 0 : index
    %c0_10 = arith.constant 0 : index
    %c0_11 = arith.constant 0 : index
    %9 = vector.load %arg6[%c0_9, %c0_10, %c0_11] : memref<1x8x1024xf32, #tpu.memory_space<vmem>>, vector<1x8x1024xf32>
    %10 = vector.shape_cast %9 : vector<1x8x1024xf32> to vector<8x1024xf32>
    %11 = vector.shape_cast %8 : vector<8x1024xf32> to vector<1x8x1024xf32>
    tpu.vector_store %arg6[%c0_9, %c0_10, %c0_11], %11 {strides = array<i32>} : memref<1x8x1024xf32, #tpu.memory_space<vmem>>, vector<1x8x1024xf32>,
    return
  }
  func.func @transform_0(%arg0: i32, %arg1: i32) -> (i32, i32, i32) {
    %c0_i32 = arith.constant 0 : i32
    %c0_i32_0 = arith.constant 0 : i32
    return %arg0, %c0_i32, %arg1 : i32, i32, i32
  }
  func.func @transform_1(%arg0: i32, %arg1: i32) -> (i32, i32) {
    %c0_i32 = arith.constant 0 : i32
    %c0_i32_0 = arith.constant 0 : i32
    %c0_i32_1 = arith.constant 0 : i32
    return %c0_i32, %c0_i32_0 : i32, i32
  }
  func.func @transform_2(%arg0: i32, %arg1: i32) -> (i32, i32) {
    %c0_i32 = arith.constant 0 : i32
    %c0_i32_0 = arith.constant 0 : i32
    %c0_i32_1 = arith.constant 0 : i32
    return %c0_i32, %c0_i32_0 : i32, i32
  }
  func.func @transform_3(%arg0: i32, %arg1: i32) -> (i32, i32) {
    %c0_i32 = arith.constant 0 : i32
    %c0_i32_0 = arith.constant 0 : i32
    %c0_i32_1 = arith.constant 0 : i32
    return %c0_i32, %c0_i32_0 : i32, i32
  }
  func.func @transform_4(%arg0: i32, %arg1: i32) -> (i32, i32, i32) {
    %c0_i32 = arith.constant 0 : i32
    %c0_i32_0 = arith.constant 0 : i32
    return %arg0, %c0_i32, %arg1 : i32, i32, i32
  }
}

module attributes {stable_mosaic.version = 11 : i64} {
  func.func @upblock2_kernel(%arg0: i32, %arg1: i32, %arg2: memref<1x4x256xf32, #tpu.memory_space<vmem>>, %arg3: memref<8x4xf32, #tpu.memory_space<vmem>>, %arg4: memref<8x1xf32, #tpu.memory_space<vmem>>, %arg5: memref<256x1024xf32, #tpu.memory_space<vmem>>, %arg6: memref<1x8x1024xf32, #tpu.memory_space<vmem>>) attributes {dimension_semantics = [#tpu.dimension_semantics<parallel>, #tpu.dimension_semantics<parallel>], iteration_bounds = array<i64: 2, 1>, scalar_prefetch = 0 : i64, scratch_operands = 0 : i64, tpu.core_type = #tpu.core_type<tc>, window_params = [{transform_indices = @transform_0, window_bounds = array<i64: 1, 4, 256>}, {pipeline_mode = #tpu.pipeline_mode<synchronous>, transform_indices = @transform_1, window_bounds = array<i64: 8, 4>}, {pipeline_mode = #tpu.pipeline_mode<synchronous>, transform_indices = @transform_2, window_bounds = array<i64: 8, 1>}, {pipeline_mode = #tpu.pipeline_mode<synchronous>, transform_indices = @transform_3, window_bounds = array<i64: 256, 1024>}, {transform_indices = @transform_4, window_bounds = array<i64: 1, 8, 1024>}]} {
    %c0 = arith.constant 0 : index
    %c0_0 = arith.constant 0 : index
    %c0_1 = arith.constant 0 : index
    %0 = vector.load %arg2[%c0, %c0_0, %c0_1] : memref<1x4x256xf32, #tpu.memory_space<vmem>>, vector<1x4x256xf32>
    %1 = vector.shape_cast %0 : vector<1x4x256xf32> to vector<4x256xf32>
    %c0_2 = arith.constant 0 : index
    %c0_3 = arith.constant 0 : index
    %2 = vector.load %arg3[%c0_2, %c0_3] : memref<8x4xf32, #tpu.memory_space<vmem>>, vector<8x4xf32>
    %cst = arith.constant dense<0.000000e+00> : vector<8x256xf32>
    %3 = tpu.matmul %2, %1, %cst {dimension_numbers = #tpu.dot_dimension_numbers<[1], [0], [0], [1], [0, 0, 1, 1], [], []>} : vector<8x4xf32>, vector<4x256xf32>, vector<8x256xf32> -> vector<8x256xf32>
    %c0_4 = arith.constant 0 : index
    %c0_5 = arith.constant 0 : index
    %4 = vector.load %arg4[%c0_4, %c0_5] : memref<8x1xf32, #tpu.memory_space<vmem>>, vector<8x1xf32>
    %5 = vector.broadcast %4 : vector<8x1xf32> to vector<8x256xf32>
    %6 = arith.addf %3, %5 : vector<8x256xf32>
    %c0_6 = arith.constant 0 : index
    %c0_7 = arith.constant 0 : index
    %7 = vector.load %arg5[%c0_6, %c0_7] : memref<256x1024xf32, #tpu.memory_space<vmem>>, vector<256x1024xf32>
    %cst_8 = arith.constant dense<0.000000e+00> : vector<8x1024xf32>
    %8 = tpu.matmul %6, %7, %cst_8 {dimension_numbers = #tpu.dot_dimension_numbers<[1], [0], [0], [1], [0, 0, 1, 1], [], []>} : vector<8x256xf32>, vector<256x1024xf32>, vector<8x1024xf32> -> vector<8x1024xf32>
    %c0_9 = arith.constant 0 : index
    %c0_10 = arith.constant 0 : index
    %c0_11 = arith.constant 0 : index
    %9 = vector.load %arg6[%c0_9, %c0_10, %c0_11] : memref<1x8x1024xf32, #tpu.memory_space<vmem>>, vector<1x8x1024xf32>
    %10 = vector.shape_cast %9 : vector<1x8x1024xf32> to vector<8x1024xf32>
    %11 = vector.shape_cast %8 : vector<8x1024xf32> to vector<1x8x1024xf32>
    tpu.vector_store %arg6[%c0_9, %c0_10, %c0_11], %11 {strides = array<i32>} : memref<1x8x1024xf32, #tpu.memory_space<vmem>>, vector<1x8x1024xf32>,
    return
  }
  func.func @transform_0(%arg0: i32, %arg1: i32) -> (i32, i32, i32) {
    %c0_i32 = arith.constant 0 : i32
    %c0_i32_0 = arith.constant 0 : i32
    return %arg0, %c0_i32, %arg1 : i32, i32, i32
  }
  func.func @transform_1(%arg0: i32, %arg1: i32) -> (i32, i32) {
    %c0_i32 = arith.constant 0 : i32
    %c0_i32_0 = arith.constant 0 : i32
    %c0_i32_1 = arith.constant 0 : i32
    return %c0_i32, %c0_i32_0 : i32, i32
  }
  func.func @transform_2(%arg0: i32, %arg1: i32) -> (i32, i32) {
    %c0_i32 = arith.constant 0 : i32
    %c0_i32_0 = arith.constant 0 : i32
    %c0_i32_1 = arith.constant 0 : i32
    return %c0_i32, %c0_i32_0 : i32, i32
  }
  func.func @transform_3(%arg0: i32, %arg1: i32) -> (i32, i32) {
    %c0_i32 = arith.constant 0 : i32
    %c0_i32_0 = arith.constant 0 : i32
    %c0_i32_1 = arith.constant 0 : i32
    return %c0_i32, %c0_i32_0 : i32, i32
  }
  func.func @transform_4(%arg0: i32, %arg1: i32) -> (i32, i32, i32) {
    %c0_i32 = arith.constant 0 : i32
    %c0_i32_0 = arith.constant 0 : i32
    return %arg0, %c0_i32, %arg1 : i32, i32, i32
  }
}

</mosaic_0001>

<bundles_post_ra>
// kernel: tpu_custom_call.1
= control target key start
LH: loop header
LB: loop body
LE: loop exit
PB: predicated region body
PF: predicated region fallthrough
CT: control target
= control target key end

     0   :  { %9 = vsyncpa [#allocation3], 0  ;;  %s1641_s0 = inlined_call_operand.vmem [shape: f32[2,4,256], index: 0, kind: input, shape index: {}]   ;;  %s1642_s1 = inlined_call_operand.vmem [shape: f32[8,4], index: 1, kind: input, shape index: {}]   ;;  %s1643_s2 = inlined_call_operand.vmem [shape: f32[8,1], index: 2, kind: input, shape index: {}]   ;;  %s1644_s3 = inlined_call_operand.hbm [shape: f32[256,1024], index: 3, kind: input, shape index: {}]   ;;  %s1645_s4 = inlined_call_operand.hbm [shape: f32[2,8,1024], index: 4, kind: output, shape index: {}]  }
   0x1   :  { %10 = vsyncpa [#allocation4], 0 }
   0x2   :  { %12 = vsyncpa [#allocation4 + $0x1], 0  ;;  %s1476_s15 = smov 0   ;;  %s1478_s16 = smov 0  }
   0x3   :  { %s1480_s17 = smov 0   ;;  %s1482_s18 = smov 0  }
   0x4   :  { %s1484_s19 = smov 0   ;;  %s1486_s20 = smov 0  }
   0x5 LB: > { %s985_s21 = sadd.s32 4294967295, %s1443_s20   ;;  %s986_s22 = sadd.s32 4294967294, %s1443_s20   ;;  %s1443_s20 = sphi %s1486_s20, %s18_s20   ;;  %s1439_s19 = sphi %s1484_s19, %s1663_s19   ;;  %s1435_s18 = sphi %s1482_s18, %s1662_s18   ;;  %s1431_s17 = sphi %s1480_s17, %s1661_s17   ;;  %s1427_s16 = sphi %s1478_s16, %s1660_s16   ;;  %s1423_s15 = sphi %s1476_s15, %s1659_s15  }
   0x6   : > { %s30_s23 = sadd.s32 1, %s1439_s19  ;;  %s130_s24 = sadd.s32 1, %s1431_s17 }
   0x7   : > { %p32_p0 = scmp.ge.s32.totalorder %s30_s23, 2  ;;  %p140_p1 = scmp.ne.s32.totalorder %s1431_s17, %s1427_s16 }
   0x8   : > { %p141_p2 = scmp.eq.s32.totalorder %s985_s21, 1  ;;  %p146_p3 = scmp.ne.s32.totalorder %s1427_s16, %s1423_s15 }
   0x9   : > { %s1665_s23 = smov (%p32_p0, %s30_s23), 0  ;;  %p147_p5 = scmp.eq.s32.totalorder %s986_s22, 1 }
   0xa   : > { %p1516_p4 = por %p141_p2, %p140_p1  ;;  %s125_s26 = ssub.s32 %s1439_s19, %s1665_s23 }
   0xb   : > { %p987_p6 = scmp.ge.s32.totalorder %s1443_s20, 1  ;;  %p128_p7 = scmp.eq.s32.totalorder %s125_s26, 0 }
   0xc   : > { %s1650_s25 = scalar_select %p1516_p4, 1, 0 }
   0xd   : > { %p1523_p8 = por %p147_p5, %p146_p3  ;;  %p154_p9 = scmp.lt.s32.totalorder %s1443_s20, 3 }
   0xe   : > { %s1529_s28 = scalar_select %p128_p7, %s1431_s17, %s130_s24  }
   0xf   : > { %s1651_s27 = scalar_select %p1523_p8, 1, 0 }
  0x10   : > { %p1531_p10 = pnand %p987_p6, %p154_p9  ;;  %p1535_p11 = scmp.eq.s32.totalorder %s985_s21, 0 }
  0x11   : > { %s1445_s5 = smov [#allocation2]   ;;  %s1333_s10 = scalar_lea.hbm %s1644_s3, 32768 }
  0x12   : > { %s1652_s29 = scalar_select %p1531_p10, 1, 0 }
  0x13   : > { %s1653_s30 = scalar_select %p1535_p11, 1, 0 }
  0x14   : > { %p1267_p12 = pneg %p1531_p10  ;;  %s172_s6 = sshll.u32 %s1445_s5, 4  ;;  %s173_s6 = int_to_ptr.vmem [resolvable:$true] %s172_s6 }
  0x15   : > { %p1334_p0 = scmp.ne.s32.totalorder %s1644_s3, %s1333_s10  ;;  %p1340_p5 = scmp.lt.u32.totalorder %s1333_s10, %s1644_s3 }
  0x16   : > { %p1543_p13 = pnand %p1535_p11, %p1267_p12 }
  0x18   : > { %p1335_p1 = pneg %p1543_p13 }
  0x1a   : > { %p1336_p2 = pnand %p1335_p1, %p1334_p0 }
  0x1c   : > { %p1337_p3 = pneg %p1336_p2 }
  0x1e   : > { %p1342_p6 = pnand %p1340_p5, %p1337_p3 }
  0x20   : > { %1345 = shalt.err (!%p1342_p6)
}
  0x21   : > { %s1346_s21 = scalar_lea.vmem %s173_s6, 32768  ;;  %p1354_p8 = scmp.lt.s32.totalorder %s173_s6, %s173_s6 }
  0x22   : > { %p1347_p7 = scmp.ne.s32.totalorder %s173_s6, %s1346_s21  ;;  %p1355_p4 = scmp.lt.s32.totalorder %s1346_s21, %s1346_s21 }
  0x24   : > { %p1349_p9 = pnand %p1347_p7, %p1335_p1  ;;  %p1356_p11 = por %p1355_p4, %p1354_p8 }
  0x26   : > { %p1350_p12 = pneg %p1349_p9 }
  0x28   : > { %p1357_p10 = pnand %p1356_p11, %p1350_p12 }
  0x2a   : > { %1360 = shalt.err (!%p1357_p10)
}
  0x2b   : > { %s1446_s22 = smov 1024   ;;  %s1447_s24 = smov 64  }
  0x2c   : > { %1270 = dma.hbm_to_vmem [thread:$0]  (!%p1543_p13), %s1644_s3, 32768, %s173_s6, [#allocation3], %s1446_s22, %s1446_s22, %s1447_s24  }
  0x2d   : > { %p1655_p0 = scmp.ne.s32.totalorder %s1652_s29, 0 }
  0x2e   : > { %p1656_p2 = scmp.ne.s32.totalorder (!%p1655_p0), %s1653_s30, 0 }
  0x2f   : > { %201 = sbr.rel (%p1655_p0) target bundleno = 573 (0x23d), region = 36 }
  0x36   : > { %1414 = dma.done.wait (%p1656_p2), [#allocation3], 32768  }
  0x37   : > { %1416 = vsyncadd (%p1656_p2), [#allocation3], 4294934528  ;;  %p232_p4 = scmp.lt.s32.totalorder %s1435_s18, 1  ;;  %v1448_v0 = vmov 0.0   ;;  %v1449_v1 = vmov 0   ;;  %vm256_vm0 = vcmask 1043456  }
  0x38   : > { %325 = vmatprep.mubr.f32.mxu0 %v1448_v0  ;;  %1331 = vset.pattern.permute.xlu0 %v1449_v1  ;;  %v243_v3 = vld [vmem:[%s1642_s1] sm:$0xff]  ;;  %v333_v6 = vld [vmem:[#allocation2 + $0x8] sm:$0xff]  ;;  %v335_v8 = vld [vmem:[#allocation2 + $0x18] sm:$0xff]  ;;  %vm252_vm1 = vcmask 31744   ;;  %s228_s13 = sand.u32 1, %s1427_s16   ;;  %s1004_s22 = sshll.u32 %s1435_s18, 10 }
  0x39   : > { %s233_s8 = scalar_select %p232_p4, %s1435_s18, 1  ;;  %v244_v4 = vld [vmem:[%s1643_s2] sm:$0xff]  ;;  %v341_v7 = vld [vmem:[#allocation2 + $0x48] sm:$0xff]  ;;  %v343_v10 = vld [vmem:[#allocation2 + $0x58] sm:$0xff] }
  0x3a   : > { %247 = vperm.xlu0 %1331, %v244_v4   ;;  %v1005_v9 = vpack.c.bf16 %v341_v7, %v333_v6  ;;  %v332_v11 = vld [vmem:[#allocation2] sm:$0xff]  ;;  %v1069_v13 = vpack.c.bf16 %v343_v10, %v335_v8  ;;  %v334_v15 = vld [vmem:[#allocation2 + $0x10] sm:$0xff]  ;;  %v349_v17 = vld [vmem:[#allocation2 + $0x88] sm:$0xff]  ;;  %s992_s14 = sshll.u32 %s228_s13, 6  ;;  %s881_s18 = scalar_lea.sflag [#allocation4], %s228_s13 }
  0x3b   : > { %s1003_s7 = sshll.u32 %s233_s8, 3  ;;  %v340_v12 = vld [vmem:[#allocation2 + $0x40] sm:$0xff]  ;;  %v342_v16 = vld [vmem:[#allocation2 + $0x50] sm:$0xff]  ;;  %v357_v19 = vld [vmem:[#allocation2 + $0xc8] sm:$0xff]  ;;  %s230_s21 = scalar_lea.vmem [#allocation5], %s992_s14 }
  0x3c   : > { %s239_s29 = scalar_lea.vmem %s1641_s0, %s1003_s7  ;;  %v1007_v14 = vpack.c.bf16 %v340_v12, %v332_v11  ;;  %1006 = vmatprep.subr.bf16.mxu1 %v1005_v9  ;;  %v1071_v18 = vpack.c.bf16 %v342_v16, %v334_v15  ;;  %v351_v20 = vld [vmem:[#allocation2 + $0x98] sm:$0xff]  ;;  %v1009_v22 = vpack.c.bf16 %v357_v19, %v349_v17  ;;  %v348_v24 = vld [vmem:[#allocation2 + $0x80] sm:$0xff]  ;;  %v350_v26 = vld [vmem:[#allocation2 + $0x90] sm:$0xff]  ;;  %s897_s24 = sshll.u32 %s230_s21, 4  ;;  %s1596_s24 = int_to_ptr.vmem [resolvable:$true] %s897_s24 }
  0x3d   : > { %v242_v2 = vld [vmem:[%s239_s29] sm:$0xff]  ;;  %v359_v21 = vld [vmem:[#allocation2 + $0xd8] sm:$0xff]  ;;  %v358_v28 = vld [vmem:[#allocation2 + $0xd0] sm:$0xff]  ;;  %s1594_s8 = scalar_lea.hbm %s1645_s4, %s1004_s22  ;;  %s1361_s7 = scalar_lea.vmem %s1596_s24, 1024 }
  0x3e   : > { %v251_v5 = vcombine.high %v242_v2, %v242_v2  ;;  %v1073_v23 = vpack.c.bf16 %v359_v21, %v351_v20  ;;  %v356_v25 = vld [vmem:[#allocation2 + $0xc0] sm:$0xff]  ;;  %1008 = vmatpush1.bf16.msra.mxu1 %v1007_v14  ;;  %v365_v29 = vld [vmem:[#allocation2 + $0x108] sm:$0xff]  ;;  %v1075_v31 = vpack.c.bf16 %v358_v28, %v350_v26  ;;  %v367_v33 = vld [vmem:[#allocation2 + $0x118] sm:$0xff]  ;;  %p1362_p8 = scmp.ne.s32.totalorder %s1596_s24, %s1361_s7  ;;  %p1657_p10 = scmp.ne.s32.totalorder %s1650_s25, 0 }
  0x3f   : > { %v1011_v27 = vpack.c.bf16 %v356_v25, %v348_v24  ;;  %v373_v30 = vld [vmem:[#allocation2 + $0x148] sm:$0xff]  ;;  %1010 = vmatprep.subr.bf16.mxu1 %v1009_v22  ;;  %v375_v34 = vld [vmem:[#allocation2 + $0x158] sm:$0xff]  ;;  %v364_v35 = vld [vmem:[#allocation2 + $0x100] sm:$0xff]  ;;  %s1450_s9 = smov [#allocation5]  }
  0x40   : > { %995 = vmatprep.subr.msk.mxu0 %vm256_vm0, %v251_v5  ;;  %v1013_v32 = vpack.c.bf16 %v373_v30, %v365_v29  ;;  %v1077_v36 = vpack.c.bf16 %v375_v34, %v367_v33  ;;  %v372_v37 = vld [vmem:[#allocation2 + $0x140] sm:$0xff]  ;;  %v366_v38 = vld [vmem:[#allocation2 + $0x110] sm:$0xff]  ;;  %v381_v40 = vld [vmem:[#allocation2 + $0x188] sm:$0xff]  ;;  %p1363_p11 = pnand %p1362_p8, %p1657_p10  ;;  %s1365_s6 = sshll.u32 %s1450_s9, 4  ;;  %s1366_s6 = int_to_ptr.vmem [resolvable:$false] %s1365_s6 }
  0x41   : > { %996 = vmatpush1.msk.msra.mxu0 %vm256_vm0, %v242_v2  ;;  %v374_v39 = vld [vmem:[#allocation2 + $0x150] sm:$0xff]  ;;  %v389_v41 = vld [vmem:[#allocation2 + $0x1c8] sm:$0xff]  ;;  %v383_v42 = vld [vmem:[#allocation2 + $0x198] sm:$0xff]  ;;  %v1015_v43 = vpack.c.bf16 %v372_v37, %v364_v35  ;;  %s1367_s29 = scalar_lea.vmem %s1366_s6, 2048  ;;  %p1368_p1 = scmp.lt.s32.totalorder %s1596_s24, %s1366_s6 }
  0x42   : > { %997 = vmatmul.mubr.msk.f32.vlgmr.msra.gmra.mrb[0].mxu0 %vm252_vm1, %v243_v3  ;;  %1070 = vmatprep.subr.bf16.mxu0 %v1069_v13  ;;  %v1079_v44 = vpack.c.bf16 %v374_v39, %v366_v38  ;;  %v391_v45 = vld [vmem:[#allocation2 + $0x1d8] sm:$0xff]  ;;  %v380_v46 = vld [vmem:[#allocation2 + $0x180] sm:$0xff]  ;;  %v1017_v48 = vpack.c.bf16 %v389_v41, %v381_v40  ;;  %v382_v50 = vld [vmem:[#allocation2 + $0x190] sm:$0xff]  ;;  %p1364_p13 = pneg %p1363_p11  ;;  %p1369_p3 = scmp.lt.s32.totalorder %s1367_s29, %s1361_s7 }
  0x43   : > { %1072 = vmatpush1.bf16.msra.mxu0 %v1071_v18  ;;  %1012 = vmatpush1.bf16.msra.mxu1 %v1011_v27  ;;  %v388_v47 = vld [vmem:[#allocation2 + $0x1c0] sm:$0xff]  ;;  %v1081_v49 = vpack.c.bf16 %v391_v45, %v383_v42  ;;  %v390_v51 = vld [vmem:[#allocation2 + $0x1d0] sm:$0xff]  ;;  %v397_v52 = vld [vmem:[#allocation2 + $0x208] sm:$0xff] }
  0x44   : > { %1074 = vmatprep.subr.bf16.mxu0 %v1073_v23  ;;  %1014 = vmatprep.subr.bf16.mxu1 %v1013_v32  ;;  %v405_v53 = vld [vmem:[#allocation2 + $0x248] sm:$0xff]  ;;  %v399_v54 = vld [vmem:[#allocation2 + $0x218] sm:$0xff]  ;;  %v1019_v56 = vpack.c.bf16 %v388_v47, %v380_v46  ;;  %v1083_v57 = vpack.c.bf16 %v390_v51, %v382_v50  ;;  %v396_v58 = vld [vmem:[#allocation2 + $0x200] sm:$0xff]  ;;  %p1370_p5 = por %p1369_p3, %p1368_p1 }
  0x45   : > { %v407_v55 = vld [vmem:[#allocation2 + $0x258] sm:$0xff]  ;;  %v404_v59 = vld [vmem:[#allocation2 + $0x240] sm:$0xff]  ;;  %v1021_v60 = vpack.c.bf16 %v405_v53, %v397_v52  ;;  %v398_v62 = vld [vmem:[#allocation2 + $0x210] sm:$0xff] }
  0x46   : > { %v1085_v61 = vpack.c.bf16 %v407_v55, %v399_v54  ;;  %v406_v63 = vld [vmem:[#allocation2 + $0x250] sm:$0xff]  ;;  %v413_v0 = vld [vmem:[#allocation2 + $0x288] sm:$0xff]  ;;  %v415_v2 = vld [vmem:[#allocation2 + $0x298] sm:$0xff]  ;;  %v1023_v4 = vpack.c.bf16 %v404_v59, %v396_v58  ;;  %p1371_p6 = pnand %p1370_p5, %p1364_p13 }
  0x47   : > { %1076 = vmatpush1.bf16.msra.mxu0 %v1075_v31  ;;  %1016 = vmatpush1.bf16.msra.mxu1 %v1015_v43  ;;  %v421_v1 = vld [vmem:[#allocation2 + $0x2c8] sm:$0xff]  ;;  %v423_v3 = vld [vmem:[#allocation2 + $0x2d8] sm:$0xff]  ;;  %v1087_v5 = vpack.c.bf16 %v406_v63, %v398_v62  ;;  %v412_v6 = vld [vmem:[#allocation2 + $0x280] sm:$0xff] }
  0x48   : > { %1078 = vmatprep.subr.bf16.mxu0 %v1077_v36  ;;  %1018 = vmatprep.subr.bf16.mxu1 %v1017_v48  ;;  %v420_v7 = vld [vmem:[#allocation2 + $0x2c0] sm:$0xff]  ;;  %v1025_v8 = vpack.c.bf16 %v421_v1, %v413_v0  ;;  %v1089_v9 = vpack.c.bf16 %v423_v3, %v415_v2  ;;  %v414_v10 = vld [vmem:[#allocation2 + $0x290] sm:$0xff]  ;;  %v429_v12 = vld [vmem:[#allocation2 + $0x308] sm:$0xff] }
  0x49   : > { %v422_v11 = vld [vmem:[#allocation2 + $0x2d0] sm:$0xff]  ;;  %v437_v13 = vld [vmem:[#allocation2 + $0x348] sm:$0xff]  ;;  %v431_v14 = vld [vmem:[#allocation2 + $0x318] sm:$0xff]  ;;  %v1027_v16 = vpack.c.bf16 %v420_v7, %v412_v6 }
  0x4a   : > { %v439_v15 = vld [vmem:[#allocation2 + $0x358] sm:$0xff]  ;;  %v1091_v17 = vpack.c.bf16 %v422_v11, %v414_v10  ;;  %v428_v18 = vld [vmem:[#allocation2 + $0x300] sm:$0xff]  ;;  %v1029_v20 = vpack.c.bf16 %v437_v13, %v429_v12  ;;  %v430_v22 = vld [vmem:[#allocation2 + $0x310] sm:$0xff] }
  0x4b   : > { %1080 = vmatpush1.bf16.msra.mxu0 %v1079_v44  ;;  %1020 = vmatpush1.bf16.msra.mxu1 %v1019_v56  ;;  %v436_v19 = vld [vmem:[#allocation2 + $0x340] sm:$0xff]  ;;  %v1093_v21 = vpack.c.bf16 %v439_v15, %v431_v14  ;;  %v438_v23 = vld [vmem:[#allocation2 + $0x350] sm:$0xff]  ;;  %v445_v24 = vld [vmem:[#allocation2 + $0x388] sm:$0xff] }
  0x4c   : > { %1082 = vmatprep.subr.bf16.mxu0 %v1081_v49  ;;  %1022 = vmatprep.subr.bf16.mxu1 %v1021_v60  ;;  %v453_v25 = vld [vmem:[#allocation2 + $0x3c8] sm:$0xff]  ;;  %v447_v26 = vld [vmem:[#allocation2 + $0x398] sm:$0xff]  ;;  %v1031_v28 = vpack.c.bf16 %v436_v19, %v428_v18  ;;  %v1095_v29 = vpack.c.bf16 %v438_v23, %v430_v22  ;;  %v444_v30 = vld [vmem:[#allocation2 + $0x380] sm:$0xff] }
  0x4d   : > { %v455_v27 = vld [vmem:[#allocation2 + $0x3d8] sm:$0xff]  ;;  %v452_v31 = vld [vmem:[#allocation2 + $0x3c0] sm:$0xff]  ;;  %v1033_v32 = vpack.c.bf16 %v453_v25, %v445_v24  ;;  %v446_v34 = vld [vmem:[#allocation2 + $0x390] sm:$0xff] }
  0x4e   : > { %v1097_v33 = vpack.c.bf16 %v455_v27, %v447_v26  ;;  %v454_v35 = vld [vmem:[#allocation2 + $0x3d0] sm:$0xff]  ;;  %v461_v36 = vld [vmem:[#allocation2 + $0x408] sm:$0xff]  ;;  %v463_v38 = vld [vmem:[#allocation2 + $0x418] sm:$0xff]  ;;  %v1035_v40 = vpack.c.bf16 %v452_v31, %v444_v30 }
  0x4f   : > { %1084 = vmatpush1.bf16.msra.mxu0 %v1083_v57  ;;  %1024 = vmatpush1.bf16.msra.mxu1 %v1023_v4  ;;  %v469_v37 = vld [vmem:[#allocation2 + $0x448] sm:$0xff]  ;;  %v471_v39 = vld [vmem:[#allocation2 + $0x458] sm:$0xff]  ;;  %v1099_v41 = vpack.c.bf16 %v454_v35, %v446_v34  ;;  %v460_v42 = vld [vmem:[#allocation2 + $0x400] sm:$0xff] }
  0x50   : > { %1086 = vmatprep.subr.bf16.mxu0 %v1085_v61  ;;  %1026 = vmatprep.subr.bf16.mxu1 %v1025_v8  ;;  %v468_v43 = vld [vmem:[#allocation2 + $0x440] sm:$0xff]  ;;  %v1037_v44 = vpack.c.bf16 %v469_v37, %v461_v36  ;;  %v1101_v45 = vpack.c.bf16 %v471_v39, %v463_v38  ;;  %v462_v46 = vld [vmem:[#allocation2 + $0x410] sm:$0xff]  ;;  %v477_v48 = vld [vmem:[#allocation2 + $0x488] sm:$0xff] }
  0x51   : > { %v470_v47 = vld [vmem:[#allocation2 + $0x450] sm:$0xff]  ;;  %v485_v49 = vld [vmem:[#allocation2 + $0x4c8] sm:$0xff]  ;;  %v479_v50 = vld [vmem:[#allocation2 + $0x498] sm:$0xff]  ;;  %v1039_v52 = vpack.c.bf16 %v468_v43, %v460_v42 }
  0x52   : > { %v487_v51 = vld [vmem:[#allocation2 + $0x4d8] sm:$0xff]  ;;  %v1103_v53 = vpack.c.bf16 %v470_v47, %v462_v46  ;;  %v476_v54 = vld [vmem:[#allocation2 + $0x480] sm:$0xff]  ;;  %v1041_v56 = vpack.c.bf16 %v485_v49, %v477_v48  ;;  %v478_v58 = vld [vmem:[#allocation2 + $0x490] sm:$0xff] }
  0x53   : > { %1088 = vmatpush1.bf16.msra.mxu0 %v1087_v5  ;;  %1028 = vmatpush1.bf16.msra.mxu1 %v1027_v16  ;;  %v484_v55 = vld [vmem:[#allocation2 + $0x4c0] sm:$0xff]  ;;  %v1105_v57 = vpack.c.bf16 %v487_v51, %v479_v50  ;;  %v486_v59 = vld [vmem:[#allocation2 + $0x4d0] sm:$0xff]  ;;  %v493_v60 = vld [vmem:[#allocation2 + $0x508] sm:$0xff] }
  0x54   : > { %1090 = vmatprep.subr.bf16.mxu0 %v1089_v9  ;;  %1030 = vmatprep.subr.bf16.mxu1 %v1029_v20  ;;  %v501_v61 = vld [vmem:[#allocation2 + $0x548] sm:$0xff]  ;;  %v495_v62 = vld [vmem:[#allocation2 + $0x518] sm:$0xff]  ;;  %v1043_v0 = vpack.c.bf16 %v484_v55, %v476_v54  ;;  %v1107_v1 = vpack.c.bf16 %v486_v59, %v478_v58  ;;  %v492_v2 = vld [vmem:[#allocation2 + $0x500] sm:$0xff] }
  0x55   : > { %v503_v63 = vld [vmem:[#allocation2 + $0x558] sm:$0xff]  ;;  %v500_v3 = vld [vmem:[#allocation2 + $0x540] sm:$0xff]  ;;  %v1045_v4 = vpack.c.bf16 %v501_v61, %v493_v60  ;;  %v494_v6 = vld [vmem:[#allocation2 + $0x510] sm:$0xff] }
  0x56   : > { %v1109_v5 = vpack.c.bf16 %v503_v63, %v495_v62  ;;  %v502_v7 = vld [vmem:[#allocation2 + $0x550] sm:$0xff]  ;;  %v509_v8 = vld [vmem:[#allocation2 + $0x588] sm:$0xff]  ;;  %v511_v10 = vld [vmem:[#allocation2 + $0x598] sm:$0xff]  ;;  %v1047_v12 = vpack.c.bf16 %v500_v3, %v492_v2 }
  0x57   : > { %1092 = vmatpush1.bf16.msra.mxu0 %v1091_v17  ;;  %1032 = vmatpush1.bf16.msra.mxu1 %v1031_v28  ;;  %v517_v9 = vld [vmem:[#allocation2 + $0x5c8] sm:$0xff]  ;;  %v519_v11 = vld [vmem:[#allocation2 + $0x5d8] sm:$0xff]  ;;  %v1111_v13 = vpack.c.bf16 %v502_v7, %v494_v6  ;;  %v508_v14 = vld [vmem:[#allocation2 + $0x580] sm:$0xff] }
  0x58   : > { %1094 = vmatprep.subr.bf16.mxu0 %v1093_v21  ;;  %1034 = vmatprep.subr.bf16.mxu1 %v1033_v32  ;;  %v516_v15 = vld [vmem:[#allocation2 + $0x5c0] sm:$0xff]  ;;  %v1049_v16 = vpack.c.bf16 %v517_v9, %v509_v8  ;;  %v1113_v17 = vpack.c.bf16 %v519_v11, %v511_v10  ;;  %v510_v18 = vld [vmem:[#allocation2 + $0x590] sm:$0xff]  ;;  %v525_v20 = vld [vmem:[#allocation2 + $0x608] sm:$0xff] }
  0x59   : > { %v518_v19 = vld [vmem:[#allocation2 + $0x5d0] sm:$0xff]  ;;  %v533_v21 = vld [vmem:[#allocation2 + $0x648] sm:$0xff]  ;;  %v527_v22 = vld [vmem:[#allocation2 + $0x618] sm:$0xff]  ;;  %v1051_v24 = vpack.c.bf16 %v516_v15, %v508_v14 }
  0x5a   : > { %v535_v23 = vld [vmem:[#allocation2 + $0x658] sm:$0xff]  ;;  %v1115_v25 = vpack.c.bf16 %v518_v19, %v510_v18  ;;  %v524_v26 = vld [vmem:[#allocation2 + $0x600] sm:$0xff]  ;;  %v1053_v28 = vpack.c.bf16 %v533_v21, %v525_v20  ;;  %v526_v30 = vld [vmem:[#allocation2 + $0x610] sm:$0xff] }
  0x5b   : > { %1096 = vmatpush1.bf16.msra.mxu0 %v1095_v29  ;;  %1036 = vmatpush1.bf16.msra.mxu1 %v1035_v40  ;;  %v532_v27 = vld [vmem:[#allocation2 + $0x640] sm:$0xff]  ;;  %v1117_v29 = vpack.c.bf16 %v535_v23, %v527_v22  ;;  %v534_v31 = vld [vmem:[#allocation2 + $0x650] sm:$0xff]  ;;  %v541_v32 = vld [vmem:[#allocation2 + $0x688] sm:$0xff] }
  0x5c   : > { %1098 = vmatprep.subr.bf16.mxu0 %v1097_v33  ;;  %1038 = vmatprep.subr.bf16.mxu1 %v1037_v44  ;;  %v549_v33 = vld [vmem:[#allocation2 + $0x6c8] sm:$0xff]  ;;  %v543_v34 = vld [vmem:[#allocation2 + $0x698] sm:$0xff]  ;;  %v1055_v36 = vpack.c.bf16 %v532_v27, %v524_v26  ;;  %v1119_v37 = vpack.c.bf16 %v534_v31, %v526_v30  ;;  %v540_v38 = vld [vmem:[#allocation2 + $0x680] sm:$0xff] }
  0x5d   : > { %v551_v35 = vld [vmem:[#allocation2 + $0x6d8] sm:$0xff]  ;;  %v548_v39 = vld [vmem:[#allocation2 + $0x6c0] sm:$0xff]  ;;  %v1057_v40 = vpack.c.bf16 %v549_v33, %v541_v32  ;;  %v542_v42 = vld [vmem:[#allocation2 + $0x690] sm:$0xff] }
  0x5e   : > { %v550_v43 = vld [vmem:[#allocation2 + $0x6d0] sm:$0xff]  ;;  %v557_v44 = vld [vmem:[#allocation2 + $0x708] sm:$0xff]  ;;  %v559_v46 = vld [vmem:[#allocation2 + $0x718] sm:$0xff]  ;;  %v1059_v48 = vpack.c.bf16 %v548_v39, %v540_v38 }
  0x5f   : > { %1100 = vmatpush1.bf16.msra.mxu0 %v1099_v41  ;;  %1040 = vmatpush1.bf16.msra.mxu1 %v1039_v52  ;;  %v1121_v41 = vpack.c.bf16 %v551_v35, %v543_v34  ;;  %v567_v47 = vld [vmem:[#allocation2 + $0x758] sm:$0xff]  ;;  %v1123_v49 = vpack.c.bf16 %v550_v43, %v542_v42  ;;  %v556_v50 = vld [vmem:[#allocation2 + $0x700] sm:$0xff]  ;;  %v558_v54 = vld [vmem:[#allocation2 + $0x710] sm:$0xff] }
  0x60   : > { %1102 = vmatprep.subr.bf16.mxu0 %v1101_v45  ;;  %1042 = vmatprep.subr.bf16.mxu1 %v1041_v56  ;;  %v565_v45 = vld [vmem:[#allocation2 + $0x748] sm:$0xff]  ;;  %v1125_v52 = vpack.c.bf16 %v567_v47, %v559_v46  ;;  %v566_v55 = vld [vmem:[#allocation2 + $0x750] sm:$0xff]  ;;  %v575_v61 = vld [vmem:[#allocation2 + $0x798] sm:$0xff] }
  0x61   : > { %v1061_v51 = vpack.c.bf16 %v565_v45, %v557_v44  ;;  %v573_v56 = vld [vmem:[#allocation2 + $0x788] sm:$0xff]  ;;  %v1127_v59 = vpack.c.bf16 %v566_v55, %v558_v54  ;;  %v583_v62 = vld [vmem:[#allocation2 + $0x7d8] sm:$0xff]  ;;  %v574_v2 = vld [vmem:[#allocation2 + $0x790] sm:$0xff] }
  0x62   : > { %v1129_v63 = vpack.c.bf16 %v583_v62, %v575_v61  ;;  %v337_v6 = vld [vmem:[#allocation2 + $0x28] sm:$0xff]  ;;  %v339_v8 = vld [vmem:[#allocation2 + $0x38] sm:$0xff]  ;;  %v344_v14 = vld [vmem:[#allocation2 + $0x60] sm:$0xff] }
  0x63   : > { %1104 = vmatpush1.bf16.msra.mxu0 %v1103_v53  ;;  %1044 = vmatpush1.bf16.msra.mxu1 %v1043_v0  ;;  %v564_v53 = vld [vmem:[#allocation2 + $0x740] sm:$0xff]  ;;  %v345_v7 = vld [vmem:[#allocation2 + $0x68] sm:$0xff]  ;;  %v347_v10 = vld [vmem:[#allocation2 + $0x78] sm:$0xff] }
  0x64   : > { %1106 = vmatprep.subr.bf16.mxu0 %v1105_v57  ;;  %1046 = vmatprep.subr.bf16.mxu1 %v1045_v4  ;;  %v581_v57 = vld [vmem:[#allocation2 + $0x7c8] sm:$0xff]  ;;  %v1063_v58 = vpack.c.bf16 %v564_v53, %v556_v50  ;;  %v572_v0 = vld [vmem:[#allocation2 + $0x780] sm:$0xff]  ;;  %v582_v4 = vld [vmem:[#allocation2 + $0x7d0] sm:$0xff]  ;;  %v1133_v9 = vpack.c.bf16 %v345_v7, %v337_v6  ;;  %v1197_v11 = vpack.c.bf16 %v347_v10, %v339_v8 }
  0x65   : > { %v1065_v60 = vpack.c.bf16 %v581_v57, %v573_v56  ;;  %v338_v15 = vld [vmem:[#allocation2 + $0x30] sm:$0xff]  ;;  %v353_v18 = vld [vmem:[#allocation2 + $0xa8] sm:$0xff]  ;;  %v355_v21 = vld [vmem:[#allocation2 + $0xb8] sm:$0xff] }
  0x66   : > { %v361_v20 = vld [vmem:[#allocation2 + $0xe8] sm:$0xff]  ;;  %v363_v22 = vld [vmem:[#allocation2 + $0xf8] sm:$0xff]  ;;  %v352_v26 = vld [vmem:[#allocation2 + $0xa0] sm:$0xff] }
  0x67   : > { %1108 = vmatpush1.bf16.msra.mxu0 %v1107_v1  ;;  %1048 = vmatpush1.bf16.msra.mxu1 %v1047_v12  ;;  %v580_v1 = vld [vmem:[#allocation2 + $0x7c0] sm:$0xff]  ;;  %v362_v30 = vld [vmem:[#allocation2 + $0xf0] sm:$0xff]  ;;  %v369_v31 = vld [vmem:[#allocation2 + $0x128] sm:$0xff]  ;;  %v1137_v32 = vpack.c.bf16 %v361_v20, %v353_v18  ;;  %v1201_v33 = vpack.c.bf16 %v363_v22, %v355_v21 }
  0x68   : > { %1110 = vmatprep.subr.bf16.mxu0 %v1109_v5  ;;  %1050 = vmatprep.subr.bf16.mxu1 %v1049_v16  ;;  %v1067_v3 = vpack.c.bf16 %v580_v1, %v572_v0  ;;  %v1131_v5 = vpack.c.bf16 %v582_v4, %v574_v2  ;;  %v336_v12 = vld [vmem:[#allocation2 + $0x20] sm:$0xff]  ;;  %v346_v16 = vld [vmem:[#allocation2 + $0x70] sm:$0xff]  ;;  %v377_v34 = vld [vmem:[#allocation2 + $0x168] sm:$0xff] }
  0x69   : > { %v360_v27 = vld [vmem:[#allocation2 + $0xe0] sm:$0xff]  ;;  %v371_v35 = vld [vmem:[#allocation2 + $0x138] sm:$0xff]  ;;  %v370_v43 = vld [vmem:[#allocation2 + $0x130] sm:$0xff] }
  0x6a   : > { %v368_v39 = vld [vmem:[#allocation2 + $0x120] sm:$0xff]  ;;  %v378_v44 = vld [vmem:[#allocation2 + $0x170] sm:$0xff]  ;;  %v385_v45 = vld [vmem:[#allocation2 + $0x1a8] sm:$0xff] }
  0x6b   : > { %1112 = vmatpush1.bf16.msra.mxu0 %v1111_v13  ;;  %1052 = vmatpush1.bf16.msra.mxu1 %v1051_v24  ;;  %v1135_v24 = vpack.c.bf16 %v344_v14, %v336_v12  ;;  %v393_v46 = vld [vmem:[#allocation2 + $0x1e8] sm:$0xff]  ;;  %v387_v47 = vld [vmem:[#allocation2 + $0x1b8] sm:$0xff]  ;;  %v1207_v50 = vpack.c.bf16 %v378_v44, %v370_v43  ;;  %v386_v55 = vld [vmem:[#allocation2 + $0x1b0] sm:$0xff] }
  0x6c   : > { %1114 = vmatprep.subr.bf16.mxu0 %v1113_v17  ;;  %1054 = vmatprep.subr.bf16.mxu1 %v1053_v28  ;;  %v1145_v53 = vpack.c.bf16 %v393_v46, %v385_v45  ;;  %v394_v56 = vld [vmem:[#allocation2 + $0x1f0] sm:$0xff]  ;;  %v401_v57 = vld [vmem:[#allocation2 + $0x228] sm:$0xff]  ;;  %v408_v0 = vld [vmem:[#allocation2 + $0x260] sm:$0xff] }
  0x6d   : > { %v1211_v62 = vpack.c.bf16 %v394_v56, %v386_v55  ;;  %v410_v4 = vld [vmem:[#allocation2 + $0x270] sm:$0xff]  ;;  %v425_v6 = vld [vmem:[#allocation2 + $0x2e8] sm:$0xff]  ;;  %v419_v7 = vld [vmem:[#allocation2 + $0x2b8] sm:$0xff] }
  0x6e   : > { %v427_v8 = vld [vmem:[#allocation2 + $0x2f8] sm:$0xff]  ;;  %v424_v12 = vld [vmem:[#allocation2 + $0x2e0] sm:$0xff]  ;;  %v441_v18 = vld [vmem:[#allocation2 + $0x368] sm:$0xff] }
  0x6f   : > { %1116 = vmatpush1.bf16.msra.mxu0 %v1115_v25  ;;  %1056 = vmatpush1.bf16.msra.mxu1 %v1055_v36  ;;  %v1199_v25 = vpack.c.bf16 %v346_v16, %v338_v15  ;;  %v379_v36 = vld [vmem:[#allocation2 + $0x178] sm:$0xff]  ;;  %v1217_v14 = vpack.c.bf16 %v427_v8, %v419_v7  ;;  %v418_v15 = vld [vmem:[#allocation2 + $0x2b0] sm:$0xff]  ;;  %v473_v43 = vld [vmem:[#allocation2 + $0x468] sm:$0xff] }
  0x70   : > { %1118 = vmatprep.subr.bf16.mxu0 %v1117_v29  ;;  %1058 = vmatprep.subr.bf16.mxu1 %v1057_v40  ;;  %v354_v29 = vld [vmem:[#allocation2 + $0xb0] sm:$0xff]  ;;  %v376_v40 = vld [vmem:[#allocation2 + $0x160] sm:$0xff]  ;;  %v1205_v42 = vpack.c.bf16 %v379_v36, %v371_v35  ;;  %v443_v20 = vld [vmem:[#allocation2 + $0x378] sm:$0xff] }
  0x71   : > { %v1203_v38 = vpack.c.bf16 %v362_v30, %v354_v29  ;;  %v426_v16 = vld [vmem:[#allocation2 + $0x2f0] sm:$0xff]  ;;  %v449_v30 = vld [vmem:[#allocation2 + $0x3a8] sm:$0xff]  ;;  %v448_v36 = vld [vmem:[#allocation2 + $0x3a0] sm:$0xff] }
  0x72   : > { %v1219_v22 = vpack.c.bf16 %v426_v16, %v418_v15  ;;  %v442_v29 = vld [vmem:[#allocation2 + $0x370] sm:$0xff]  ;;  %v467_v44 = vld [vmem:[#allocation2 + $0x438] sm:$0xff]  ;;  %v489_v55 = vld [vmem:[#allocation2 + $0x4e8] sm:$0xff] }
  0x73   : > { %1120 = vmatpush1.bf16.msra.mxu0 %v1119_v37  ;;  %1060 = vmatpush1.bf16.msra.mxu1 %v1059_v48  ;;  %v1139_v37 = vpack.c.bf16 %v360_v27, %v352_v26  ;;  %v395_v48 = vld [vmem:[#allocation2 + $0x1f8] sm:$0xff]  ;;  %v434_v27 = vld [vmem:[#allocation2 + $0x330] sm:$0xff]  ;;  %v496_v8 = vld [vmem:[#allocation2 + $0x520] sm:$0xff] }
  0x74   : > { %1122 = vmatprep.subr.bf16.mxu0 %v1121_v41  ;;  %1062 = vmatprep.subr.bf16.mxu1 %v1061_v51  ;;  %v1141_v41 = vpack.c.bf16 %v377_v34, %v369_v31  ;;  %v384_v51 = vld [vmem:[#allocation2 + $0x1a0] sm:$0xff]  ;;  %v1209_v54 = vpack.c.bf16 %v395_v48, %v387_v47  ;;  %v457_v31 = vld [vmem:[#allocation2 + $0x3e8] sm:$0xff]  ;;  %v1223_v35 = vpack.c.bf16 %v442_v29, %v434_v27  ;;  %v475_v45 = vld [vmem:[#allocation2 + $0x478] sm:$0xff] }
  0x75   : > { %v464_v48 = vld [vmem:[#allocation2 + $0x420] sm:$0xff]  ;;  %v483_v56 = vld [vmem:[#allocation2 + $0x4b8] sm:$0xff]  ;;  %v521_v15 = vld [vmem:[#allocation2 + $0x5e8] sm:$0xff] }
  0x76   : > { %v515_v16 = vld [vmem:[#allocation2 + $0x5b8] sm:$0xff]  ;;  %v537_v27 = vld [vmem:[#allocation2 + $0x668] sm:$0xff] }
  0x77   : > { %1124 = vmatpush1.bf16.msra.mxu0 %v1123_v49  ;;  %1064 = vmatpush1.bf16.msra.mxu1 %v1063_v58  ;;  %v1143_v49 = vpack.c.bf16 %v376_v40, %v368_v39  ;;  %v409_v58 = vld [vmem:[#allocation2 + $0x268] sm:$0xff]  ;;  %v450_v40 = vld [vmem:[#allocation2 + $0x3b0] sm:$0xff]  ;;  %v531_v29 = vld [vmem:[#allocation2 + $0x638] sm:$0xff] }
  0x78   : > { %1126 = vmatprep.subr.bf16.mxu0 %v1125_v52  ;;  %1066 = vmatprep.subr.bf16.mxu1 %v1065_v60  ;;  %v392_v52 = vld [vmem:[#allocation2 + $0x1e0] sm:$0xff]  ;;  %v411_v60 = vld [vmem:[#allocation2 + $0x278] sm:$0xff]  ;;  %v1149_v1 = vpack.c.bf16 %v409_v58, %v401_v57 }
  0x79   : > { %v1147_v61 = vpack.c.bf16 %v392_v52, %v384_v51  ;;  %v1229_v51 = vpack.c.bf16 %v475_v45, %v467_v44  ;;  %v466_v52 = vld [vmem:[#allocation2 + $0x430] sm:$0xff]  ;;  %v491_v57 = vld [vmem:[#allocation2 + $0x4f8] sm:$0xff]  ;;  %v544_v45 = vld [vmem:[#allocation2 + $0x6a0] sm:$0xff] }
  0x7b   : > { %1128 = vmatpush1.bf16.msra.mxu0 %v1127_v59  ;;  %1068 = vmatpush1.bf16.msra.mxu1 %v1067_v3  ;;  %v403_v59 = vld [vmem:[#allocation2 + $0x238] sm:$0xff]  ;;  %v402_v3 = vld [vmem:[#allocation2 + $0x230] sm:$0xff] }
  0x7c   : > { %1130 = vmatprep.subr.bf16.mxu0 %v1129_v63  ;;  %1134 = vmatprep.subr.bf16.mxu1 %v1133_v9  ;;  %v400_v63 = vld [vmem:[#allocation2 + $0x220] sm:$0xff]  ;;  %v1213_v2 = vpack.c.bf16 %v411_v60, %v403_v59  ;;  %v1215_v10 = vpack.c.bf16 %v410_v4, %v402_v3  ;;  %v505_v3 = vld [vmem:[#allocation2 + $0x568] sm:$0xff]  ;;  %v499_v4 = vld [vmem:[#allocation2 + $0x538] sm:$0xff] }
  0x7d   : > { %v1151_v9 = vpack.c.bf16 %v408_v0, %v400_v63  ;;  %v480_v60 = vld [vmem:[#allocation2 + $0x4a0] sm:$0xff]  ;;  %v1233_v63 = vpack.c.bf16 %v491_v57, %v483_v56  ;;  %v482_v0 = vld [vmem:[#allocation2 + $0x4b0] sm:$0xff] }
  0x7e   : > { %v560_v57 = vld [vmem:[#allocation2 + $0x720] sm:$0xff] }
  0x7f   : > { %1132 = vmatpush1.bf16.msra.mxu0 %v1131_v5  ;;  %v417_v5 = vld [vmem:[#allocation2 + $0x2a8] sm:$0xff] }
  0x80   : > { %1198 = vmatprep.subr.bf16.mxu0 %v1197_v11  ;;  %v416_v11 = vld [vmem:[#allocation2 + $0x2a0] sm:$0xff] }
  0x81   : > { %v1155_v21 = vpack.c.bf16 %v424_v12, %v416_v11  ;;  %v498_v12 = vld [vmem:[#allocation2 + $0x530] sm:$0xff] }
  0xb9   : > { %v248_v13 = vpop.permute.xlu0 %247 }
 0x115   : > { %v327_v17 = vpop.f32.mrb[0].mxu0 }
 0x116   : > { %v329_v19 = vpop.f32.mrb[1].mxu0  ;;  %v1583_v28 = vadd.f32 %v327_v17, %v248_v13  ;;  %v433_v17 = vld [vmem:[#allocation2 + $0x328] sm:$0xff] }
 0x117   : > { %v330_v23 = vadd.f32 %v329_v19, %v248_v13  ;;  %v1153_v13 = vpack.c.bf16 %v425_v6, %v417_v5  ;;  %v435_v19 = vld [vmem:[#allocation2 + $0x338] sm:$0xff] }
 0x118   : > { %v1221_v26 = vpack.c.bf16 %v443_v20, %v435_v19  ;;  %v507_v5 = vld [vmem:[#allocation2 + $0x578] sm:$0xff]  ;;  %v512_v20 = vld [vmem:[#allocation2 + $0x5a0] sm:$0xff] }
 0x119   : > { %652 = vmatprep.mubr.f32.mxu1 %v330_v23  ;;  %723 = vmatprep.mubr.f32.mxu0 %v330_v23  ;;  %v1237_v11 = vpack.c.bf16 %v507_v5, %v499_v4  ;;  %v576_v5 = vld [vmem:[#allocation2 + $0x7a0] sm:$0xff] }
 0x11a   : > { %653 = vmatmul.mubr.f32.vlgmr.msra.gmra.mrb[0].mxu1 %v1583_v28  ;;  %724 = vmatmul.mubr.f32.vlgmr.msra.gmra.mrb[2].mxu0 %v1583_v28 }
 0x11b   : > { %1136 = vmatpush1.bf16.msra.mxu1 %v1135_v24  ;;  %1200 = vmatpush1.bf16.msra.mxu0 %v1199_v25  ;;  %v440_v24 = vld [vmem:[#allocation2 + $0x360] sm:$0xff]  ;;  %v1157_v25 = vpack.c.bf16 %v441_v18, %v433_v17  ;;  %v523_v17 = vld [vmem:[#allocation2 + $0x5f8] sm:$0xff] }
 0x11c   : > { %794 = vmatprep.mubr.f32.mxu1 %v330_v23  ;;  %865 = vmatprep.mubr.f32.mxu0 %v330_v23  ;;  %v432_v23 = vld [vmem:[#allocation2 + $0x320] sm:$0xff] }
 0x11d   : > { %1138 = vmatprep.subr.bf16.mxu1 %v1137_v32  ;;  %1202 = vmatprep.subr.bf16.mxu0 %v1201_v33  ;;  %v451_v32 = vld [vmem:[#allocation2 + $0x3b8] sm:$0xff]  ;;  %v1159_v34 = vpack.c.bf16 %v440_v24, %v432_v23  ;;  %v1241_v23 = vpack.c.bf16 %v523_v17, %v515_v16  ;;  %v514_v24 = vld [vmem:[#allocation2 + $0x5b0] sm:$0xff] }
 0x11e   : > { %v459_v33 = vld [vmem:[#allocation2 + $0x3f8] sm:$0xff] }
 0x11f   : > { %1140 = vmatpush1.bf16.msra.mxu1 %v1139_v37  ;;  %1204 = vmatpush1.bf16.msra.mxu0 %v1203_v38  ;;  %v456_v37 = vld [vmem:[#allocation2 + $0x3e0] sm:$0xff]  ;;  %v1161_v38 = vpack.c.bf16 %v457_v31, %v449_v30  ;;  %v1225_v39 = vpack.c.bf16 %v459_v33, %v451_v32  ;;  %v539_v30 = vld [vmem:[#allocation2 + $0x678] sm:$0xff] }
 0x120   : > { %1142 = vmatprep.subr.bf16.mxu1 %v1141_v41  ;;  %1206 = vmatprep.subr.bf16.mxu0 %v1205_v42  ;;  %v458_v41 = vld [vmem:[#allocation2 + $0x3f0] sm:$0xff]  ;;  %v465_v42 = vld [vmem:[#allocation2 + $0x428] sm:$0xff]  ;;  %v1163_v46 = vpack.c.bf16 %v456_v37, %v448_v36  ;;  %v528_v33 = vld [vmem:[#allocation2 + $0x620] sm:$0xff]  ;;  %v1245_v36 = vpack.c.bf16 %v539_v30, %v531_v29 }
 0x121   : > { %v1227_v47 = vpack.c.bf16 %v458_v41, %v450_v40  ;;  %v530_v37 = vld [vmem:[#allocation2 + $0x630] sm:$0xff]  ;;  %v553_v40 = vld [vmem:[#allocation2 + $0x6e8] sm:$0xff]  ;;  %v547_v41 = vld [vmem:[#allocation2 + $0x6b8] sm:$0xff] }
 0x123   : > { %1144 = vmatpush1.bf16.msra.mxu1 %v1143_v49  ;;  %1208 = vmatpush1.bf16.msra.mxu0 %v1207_v50  ;;  %v472_v49 = vld [vmem:[#allocation2 + $0x460] sm:$0xff]  ;;  %v1165_v50 = vpack.c.bf16 %v473_v43, %v465_v42  ;;  %v555_v42 = vld [vmem:[#allocation2 + $0x6f8] sm:$0xff] }
 0x124   : > { %1146 = vmatprep.subr.bf16.mxu1 %v1145_v53  ;;  %1210 = vmatprep.subr.bf16.mxu0 %v1209_v54  ;;  %v474_v53 = vld [vmem:[#allocation2 + $0x470] sm:$0xff]  ;;  %v481_v54 = vld [vmem:[#allocation2 + $0x4a8] sm:$0xff]  ;;  %v1167_v58 = vpack.c.bf16 %v472_v49, %v464_v48  ;;  %v1249_v48 = vpack.c.bf16 %v555_v42, %v547_v41 }
 0x125   : > { %v1231_v59 = vpack.c.bf16 %v474_v53, %v466_v52  ;;  %v546_v49 = vld [vmem:[#allocation2 + $0x6b0] sm:$0xff]  ;;  %v569_v52 = vld [vmem:[#allocation2 + $0x768] sm:$0xff]  ;;  %v563_v53 = vld [vmem:[#allocation2 + $0x738] sm:$0xff] }
 0x127   : > { %1148 = vmatpush1.bf16.msra.mxu1 %v1147_v61  ;;  %1212 = vmatpush1.bf16.msra.mxu0 %v1211_v62  ;;  %v488_v61 = vld [vmem:[#allocation2 + $0x4e0] sm:$0xff]  ;;  %v1169_v62 = vpack.c.bf16 %v489_v55, %v481_v54  ;;  %v571_v54 = vld [vmem:[#allocation2 + $0x778] sm:$0xff] }
 0x128   : > { %1150 = vmatprep.subr.bf16.mxu1 %v1149_v1  ;;  %1214 = vmatprep.subr.bf16.mxu0 %v1213_v2  ;;  %v490_v1 = vld [vmem:[#allocation2 + $0x4f0] sm:$0xff]  ;;  %v497_v2 = vld [vmem:[#allocation2 + $0x528] sm:$0xff]  ;;  %v1171_v6 = vpack.c.bf16 %v488_v61, %v480_v60  ;;  %v1253_v60 = vpack.c.bf16 %v571_v54, %v563_v53 }
 0x129   : > { %v1235_v7 = vpack.c.bf16 %v490_v1, %v482_v0  ;;  %v562_v61 = vld [vmem:[#allocation2 + $0x730] sm:$0xff]  ;;  %v585_v0 = vld [vmem:[#allocation2 + $0x7e8] sm:$0xff]  ;;  %v579_v1 = vld [vmem:[#allocation2 + $0x7b8] sm:$0xff] }
 0x12b   : > { %1152 = vmatpush1.bf16.msra.mxu1 %v1151_v9  ;;  %1216 = vmatpush1.bf16.msra.mxu0 %v1215_v10  ;;  %v504_v9 = vld [vmem:[#allocation2 + $0x560] sm:$0xff]  ;;  %v1173_v10 = vpack.c.bf16 %v505_v3, %v497_v2  ;;  %v587_v2 = vld [vmem:[#allocation2 + $0x7f8] sm:$0xff] }
 0x12c   : > { %1154 = vmatprep.subr.bf16.mxu1 %v1153_v13  ;;  %1218 = vmatprep.subr.bf16.mxu0 %v1217_v14  ;;  %v506_v13 = vld [vmem:[#allocation2 + $0x570] sm:$0xff]  ;;  %v513_v14 = vld [vmem:[#allocation2 + $0x5a8] sm:$0xff]  ;;  %v1175_v18 = vpack.c.bf16 %v504_v9, %v496_v8  ;;  %v584_v8 = vld [vmem:[#allocation2 + $0x7e0] sm:$0xff] }
 0x12d   : > { %v1239_v19 = vpack.c.bf16 %v506_v13, %v498_v12  ;;  %v578_v9 = vld [vmem:[#allocation2 + $0x7b0] sm:$0xff] }
 0x12f   : > { %1156 = vmatpush1.bf16.msra.mxu1 %v1155_v21  ;;  %1220 = vmatpush1.bf16.msra.mxu0 %v1219_v22  ;;  %v520_v21 = vld [vmem:[#allocation2 + $0x5e0] sm:$0xff]  ;;  %v1177_v22 = vpack.c.bf16 %v521_v15, %v513_v14 }
 0x130   : > { %1158 = vmatprep.subr.bf16.mxu1 %v1157_v25  ;;  %1222 = vmatprep.subr.bf16.mxu0 %v1221_v26  ;;  %v522_v25 = vld [vmem:[#allocation2 + $0x5f0] sm:$0xff]  ;;  %v529_v26 = vld [vmem:[#allocation2 + $0x628] sm:$0xff]  ;;  %v1179_v31 = vpack.c.bf16 %v520_v21, %v512_v20 }
 0x131   : > { %v1243_v32 = vpack.c.bf16 %v522_v25, %v514_v24 }
 0x133   : > { %1160 = vmatpush1.bf16.msra.mxu1 %v1159_v34  ;;  %1224 = vmatpush1.bf16.msra.mxu0 %v1223_v35  ;;  %v536_v34 = vld [vmem:[#allocation2 + $0x660] sm:$0xff]  ;;  %v1181_v35 = vpack.c.bf16 %v537_v27, %v529_v26 }
 0x134   : > { %1162 = vmatprep.subr.bf16.mxu1 %v1161_v38  ;;  %1226 = vmatprep.subr.bf16.mxu0 %v1225_v39  ;;  %v538_v38 = vld [vmem:[#allocation2 + $0x670] sm:$0xff]  ;;  %v545_v39 = vld [vmem:[#allocation2 + $0x6a8] sm:$0xff]  ;;  %v1183_v43 = vpack.c.bf16 %v536_v34, %v528_v33 }
 0x135   : > { %v1247_v44 = vpack.c.bf16 %v538_v38, %v530_v37 }
 0x137   : > { %1164 = vmatpush1.bf16.msra.mxu1 %v1163_v46  ;;  %1228 = vmatpush1.bf16.msra.mxu0 %v1227_v47  ;;  %v552_v46 = vld [vmem:[#allocation2 + $0x6e0] sm:$0xff]  ;;  %v1185_v47 = vpack.c.bf16 %v553_v40, %v545_v39 }
 0x138   : > { %1166 = vmatprep.subr.bf16.mxu1 %v1165_v50  ;;  %1230 = vmatprep.subr.bf16.mxu0 %v1229_v51  ;;  %v554_v50 = vld [vmem:[#allocation2 + $0x6f0] sm:$0xff]  ;;  %v561_v51 = vld [vmem:[#allocation2 + $0x728] sm:$0xff]  ;;  %v1187_v55 = vpack.c.bf16 %v552_v46, %v544_v45 }
 0x139   : > { %v1251_v56 = vpack.c.bf16 %v554_v50, %v546_v49 }
 0x13b   : > { %1168 = vmatpush1.bf16.msra.mxu1 %v1167_v58  ;;  %1232 = vmatpush1.bf16.msra.mxu0 %v1231_v59  ;;  %v568_v58 = vld [vmem:[#allocation2 + $0x760] sm:$0xff]  ;;  %v1189_v59 = vpack.c.bf16 %v569_v52, %v561_v51 }
 0x13c   : > { %1170 = vmatprep.subr.bf16.mxu1 %v1169_v62  ;;  %1234 = vmatprep.subr.bf16.mxu0 %v1233_v63  ;;  %v570_v62 = vld [vmem:[#allocation2 + $0x770] sm:$0xff]  ;;  %v577_v63 = vld [vmem:[#allocation2 + $0x7a8] sm:$0xff]  ;;  %v1191_v3 = vpack.c.bf16 %v568_v58, %v560_v57 }
 0x13d   : > { %v1255_v4 = vpack.c.bf16 %v570_v62, %v562_v61 }
 0x13f   : > { %1172 = vmatpush1.bf16.msra.mxu1 %v1171_v6  ;;  %1236 = vmatpush1.bf16.msra.mxu0 %v1235_v7  ;;  %v1193_v6 = vpack.c.bf16 %v585_v0, %v577_v63  ;;  %v1257_v7 = vpack.c.bf16 %v587_v2, %v579_v1 }
 0x140   : > { %1174 = vmatprep.subr.bf16.mxu1 %v1173_v10  ;;  %1238 = vmatprep.subr.bf16.mxu0 %v1237_v11  ;;  %v586_v10 = vld [vmem:[#allocation2 + $0x7f0] sm:$0xff]  ;;  %v1195_v11 = vpack.c.bf16 %v584_v8, %v576_v5 }
 0x141   : > { %v1259_v12 = vpack.c.bf16 %v586_v10, %v578_v9 }
 0x143   : > { %1176 = vmatpush1.bf16.msra.mxu1 %v1175_v18  ;;  %1240 = vmatpush1.bf16.msra.mxu0 %v1239_v19 }
 0x144   : > { %1178 = vmatprep.subr.bf16.mxu1 %v1177_v22  ;;  %1242 = vmatprep.subr.bf16.mxu0 %v1241_v23 }
 0x147   : > { %1180 = vmatpush1.bf16.msra.mxu1 %v1179_v31  ;;  %1244 = vmatpush1.bf16.msra.mxu0 %v1243_v32 }
 0x148   : > { %1182 = vmatprep.subr.bf16.mxu1 %v1181_v35  ;;  %1246 = vmatprep.subr.bf16.mxu0 %v1245_v36 }
 0x14b   : > { %1184 = vmatpush1.bf16.msra.mxu1 %v1183_v43  ;;  %1248 = vmatpush1.bf16.msra.mxu0 %v1247_v44 }
 0x14c   : > { %1186 = vmatprep.subr.bf16.mxu1 %v1185_v47  ;;  %1250 = vmatprep.subr.bf16.mxu0 %v1249_v48 }
 0x14f   : > { %1188 = vmatpush1.bf16.msra.mxu1 %v1187_v55  ;;  %1252 = vmatpush1.bf16.msra.mxu0 %v1251_v56 }
 0x150   : > { %1190 = vmatprep.subr.bf16.mxu1 %v1189_v59  ;;  %1254 = vmatprep.subr.bf16.mxu0 %v1253_v60 }
 0x153   : > { %1192 = vmatpush1.bf16.msra.mxu1 %v1191_v3  ;;  %1256 = vmatpush1.bf16.msra.mxu0 %v1255_v4 }
 0x154   : > { %1194 = vmatprep.subr.bf16.mxu1 %v1193_v6  ;;  %1258 = vmatprep.subr.bf16.mxu0 %v1257_v7 }
 0x157   : > { %1196 = vmatpush1.bf16.msra.mxu1 %v1195_v11  ;;  %1260 = vmatpush1.bf16.msra.mxu0 %v1259_v12 }
 0x15a   : > { %795 = vmatmul.mubr.f32.vlgmr.msra.gmra.mrb[2].mxu1 %v1583_v28  ;;  %866 = vmatmul.mubr.f32.vlgmr.msra.gmra.mrb[4].mxu0 %v1583_v28 }
 0x1ed   : > { %v654_v13 = vpop.f32.mrb[0].mxu1  ;;  %v725_v14 = vpop.f32.mrb[2].mxu0 }
 0x1ee   : > { %872 = vst [vmem:[%s230_s21] sm:$0xff] %v654_v13  ;;  %874 = vst [vmem:[%s230_s21 + $0x10] sm:$0xff] %v725_v14  ;;  %v656_v15 = vpop.f32.mrb[1].mxu1  ;;  %v727_v16 = vpop.f32.mrb[3].mxu0 }
 0x1ef   : > { %873 = vst [vmem:[%s230_s21 + $0x8] sm:$0xff] %v656_v15  ;;  %875 = vst [vmem:[%s230_s21 + $0x18] sm:$0xff] %v727_v16 }
 0x22d   : > { %v796_v17 = vpop.f32.mrb[2].mxu1  ;;  %v867_v18 = vpop.f32.mrb[4].mxu0 }
 0x22e   : > { %876 = vst [vmem:[%s230_s21 + $0x20] sm:$0xff] %v796_v17  ;;  %878 = vst [vmem:[%s230_s21 + $0x30] sm:$0xff] %v867_v18  ;;  %v798_v28 = vpop.f32.mrb[3].mxu1  ;;  %v869_v19 = vpop.f32.mrb[5].mxu0 }
 0x22f   : > { %877 = vst [vmem:[%s230_s21 + $0x28] sm:$0xff] %v798_v28  ;;  %879 = vst [vmem:[%s230_s21 + $0x38] sm:$0xff] %v869_v19 }
 0x230   : > { %1374 = shalt.err (!%p1371_p6)
}
 0x231   : > { %s1375_s10 = scalar_lea.hbm %s1594_s8, 1024  ;;  %s1379_s12 = scalar_lea.hbm %s1645_s4, 2048 }
 0x232   : > { %p1376_p7 = scmp.ne.s32.totalorder %s1594_s8, %s1375_s10  ;;  %p1380_p0 = scmp.lt.u32.totalorder %s1594_s8, %s1645_s4 }
 0x233   : > { %p1381_p2 = scmp.lt.u32.totalorder %s1379_s12, %s1375_s10  ;;  %p1383_p8 = scmp.lt.u32.totalorder %s1375_s10, %s1594_s8 }
 0x234   : > { %p1377_p9 = pnand %p1376_p7, %p1657_p10 }
 0x235   : > { %p1382_p4 = por %p1381_p2, %p1380_p0 }
 0x236   : > { %p1378_p12 = pneg %p1377_p9 }
 0x237   : > { %p1384_p11 = por %p1383_p8, %p1382_p4 }
 0x239   : > { %p1385_p13 = pnand %p1384_p11, %p1378_p12 }
 0x23b   : > { %1388 = shalt.err (!%p1385_p13)
}
 0x23c   : > { %1265 = dma.vmem_to_hbm [thread:$0]  (%p1657_p10), %s1596_s24, 1024, %s1594_s8, %s881_s18  }
 0x23d PF: > { %p1277_p1 = scmp.ge.s32.totalorder %s1443_s20, 2  ;;  %s909_s21 = sand.u32 1, %s1423_s15  }
 0x23e   : > { %p1658_p3 = scmp.ne.s32.totalorder %s1651_s27, 0  ;;  %s910_s22 = scalar_lea.sflag [#allocation4], %s909_s21 }
 0x240   : > { %p1272_p5 = pnand %p1277_p1, %p1658_p3 }
 0x242   : > { %1418 = dma.done.wait (!%p1272_p5), %s910_s22, 1024  }
 0x243   : > { %1420 = vsyncadd (!%p1272_p5), %s910_s22, 4294966272  ;;  %s18_s20 = sadd.s32 1, %s1443_s20   ;;  %s1659_s15 = smov %s1427_s16 }
 0x244   : > { %p15_p6 = scmp.ge.s32.totalorder %s18_s20, 4   ;;  %s1660_s16 = smov %s1431_s17 }
 0x245   : > { %s1661_s17 = smov %s1529_s28  ;;  %s1662_s18 = smov %s1439_s19 }
 0x246   : > { %s1663_s19 = smov %s1665_s23  ;;  %17 = sbr.rel (!%p15_p6) target bundleno = 5 (0x5), region = 76 }
 0x24d   :  { %915 = vsyncpa [#allocation3], 1 }
 0x24e   :  { %917 = vsyncpa [#allocation3 + $0x1], 1 }
 0x24f   :  { %918 = vsyncpa [#allocation4], 1 }
 0x250   :  { %920 = vsyncpa [#allocation4 + $0x1], 1 }

// kernel: tpu_custom_call.1
= control target key start
LH: loop header
LB: loop body
LE: loop exit
PB: predicated region body
PF: predicated region fallthrough
CT: control target
= control target key end

     0   :  { %9 = vsyncpa [#allocation3], 0  ;;  %s1641_s0 = inlined_call_operand.vmem [shape: f32[2,4,256], index: 0, kind: input, shape index: {}]   ;;  %s1642_s1 = inlined_call_operand.vmem [shape: f32[8,4], index: 1, kind: input, shape index: {}]   ;;  %s1643_s2 = inlined_call_operand.vmem [shape: f32[8,1], index: 2, kind: input, shape index: {}]   ;;  %s1644_s3 = inlined_call_operand.hbm [shape: f32[256,1024], index: 3, kind: input, shape index: {}]   ;;  %s1645_s4 = inlined_call_operand.hbm [shape: f32[2,8,1024], index: 4, kind: output, shape index: {}]  }
   0x1   :  { %10 = vsyncpa [#allocation4], 0 }
   0x2   :  { %12 = vsyncpa [#allocation4 + $0x1], 0  ;;  %s1476_s15 = smov 0   ;;  %s1478_s16 = smov 0  }
   0x3   :  { %s1480_s17 = smov 0   ;;  %s1482_s18 = smov 0  }
   0x4   :  { %s1484_s19 = smov 0   ;;  %s1486_s20 = smov 0  }
   0x5 LB: > { %s985_s21 = sadd.s32 4294967295, %s1443_s20   ;;  %s986_s22 = sadd.s32 4294967294, %s1443_s20   ;;  %s1443_s20 = sphi %s1486_s20, %s18_s20   ;;  %s1439_s19 = sphi %s1484_s19, %s1663_s19   ;;  %s1435_s18 = sphi %s1482_s18, %s1662_s18   ;;  %s1431_s17 = sphi %s1480_s17, %s1661_s17   ;;  %s1427_s16 = sphi %s1478_s16, %s1660_s16   ;;  %s1423_s15 = sphi %s1476_s15, %s1659_s15  }
   0x6   : > { %s30_s23 = sadd.s32 1, %s1439_s19  ;;  %s130_s24 = sadd.s32 1, %s1431_s17 }
   0x7   : > { %p32_p0 = scmp.ge.s32.totalorder %s30_s23, 2  ;;  %p140_p1 = scmp.ne.s32.totalorder %s1431_s17, %s1427_s16 }
   0x8   : > { %p141_p2 = scmp.eq.s32.totalorder %s985_s21, 1  ;;  %p146_p3 = scmp.ne.s32.totalorder %s1427_s16, %s1423_s15 }
   0x9   : > { %s1665_s23 = smov (%p32_p0, %s30_s23), 0  ;;  %p147_p5 = scmp.eq.s32.totalorder %s986_s22, 1 }
   0xa   : > { %p1516_p4 = por %p141_p2, %p140_p1  ;;  %s125_s26 = ssub.s32 %s1439_s19, %s1665_s23 }
   0xb   : > { %p987_p6 = scmp.ge.s32.totalorder %s1443_s20, 1  ;;  %p128_p7 = scmp.eq.s32.totalorder %s125_s26, 0 }
   0xc   : > { %s1650_s25 = scalar_select %p1516_p4, 1, 0 }
   0xd   : > { %p1523_p8 = por %p147_p5, %p146_p3  ;;  %p154_p9 = scmp.lt.s32.totalorder %s1443_s20, 3 }
   0xe   : > { %s1529_s28 = scalar_select %p128_p7, %s1431_s17, %s130_s24  }
   0xf   : > { %s1651_s27 = scalar_select %p1523_p8, 1, 0 }
  0x10   : > { %p1531_p10 = pnand %p987_p6, %p154_p9  ;;  %p1535_p11 = scmp.eq.s32.totalorder %s985_s21, 0 }
  0x11   : > { %s1445_s5 = smov [#allocation2]   ;;  %s1333_s10 = scalar_lea.hbm %s1644_s3, 32768 }
  0x12   : > { %s1652_s29 = scalar_select %p1531_p10, 1, 0 }
  0x13   : > { %s1653_s30 = scalar_select %p1535_p11, 1, 0 }
  0x14   : > { %p1267_p12 = pneg %p1531_p10  ;;  %s172_s6 = sshll.u32 %s1445_s5, 4  ;;  %s173_s6 = int_to_ptr.vmem [resolvable:$true] %s172_s6 }
  0x15   : > { %p1334_p0 = scmp.ne.s32.totalorder %s1644_s3, %s1333_s10  ;;  %p1340_p5 = scmp.lt.u32.totalorder %s1333_s10, %s1644_s3 }
  0x16   : > { %p1543_p13 = pnand %p1535_p11, %p1267_p12 }
  0x18   : > { %p1335_p1 = pneg %p1543_p13 }
  0x1a   : > { %p1336_p2 = pnand %p1335_p1, %p1334_p0 }
  0x1c   : > { %p1337_p3 = pneg %p1336_p2 }
  0x1e   : > { %p1342_p6 = pnand %p1340_p5, %p1337_p3 }
  0x20   : > { %1345 = shalt.err (!%p1342_p6)
}
  0x21   : > { %s1346_s21 = scalar_lea.vmem %s173_s6, 32768  ;;  %p1354_p8 = scmp.lt.s32.totalorder %s173_s6, %s173_s6 }
  0x22   : > { %p1347_p7 = scmp.ne.s32.totalorder %s173_s6, %s1346_s21  ;;  %p1355_p4 = scmp.lt.s32.totalorder %s1346_s21, %s1346_s21 }
  0x24   : > { %p1349_p9 = pnand %p1347_p7, %p1335_p1  ;;  %p1356_p11 = por %p1355_p4, %p1354_p8 }
  0x26   : > { %p1350_p12 = pneg %p1349_p9 }
  0x28   : > { %p1357_p10 = pnand %p1356_p11, %p1350_p12 }
  0x2a   : > { %1360 = shalt.err (!%p1357_p10)
}
  0x2b   : > { %s1446_s22 = smov 1024   ;;  %s1447_s24 = smov 64  }
  0x2c   : > { %1270 = dma.hbm_to_vmem [thread:$0]  (!%p1543_p13), %s1644_s3, 32768, %s173_s6, [#allocation3], %s1446_s22, %s1446_s22, %s1447_s24  }
  0x2d   : > { %p1655_p0 = scmp.ne.s32.totalorder %s1652_s29, 0 }
  0x2e   : > { %p1656_p2 = scmp.ne.s32.totalorder (!%p1655_p0), %s1653_s30, 0 }
  0x2f   : > { %201 = sbr.rel (%p1655_p0) target bundleno = 573 (0x23d), region = 36 }
  0x36   : > { %1414 = dma.done.wait (%p1656_p2), [#allocation3], 32768  }
  0x37   : > { %1416 = vsyncadd (%p1656_p2), [#allocation3], 4294934528  ;;  %p232_p4 = scmp.lt.s32.totalorder %s1435_s18, 1  ;;  %v1448_v0 = vmov 0.0   ;;  %v1449_v1 = vmov 0   ;;  %vm256_vm0 = vcmask 1043456  }
  0x38   : > { %325 = vmatprep.mubr.f32.mxu0 %v1448_v0  ;;  %1331 = vset.pattern.permute.xlu0 %v1449_v1  ;;  %v243_v3 = vld [vmem:[%s1642_s1] sm:$0xff]  ;;  %v333_v6 = vld [vmem:[#allocation2 + $0x8] sm:$0xff]  ;;  %v335_v8 = vld [vmem:[#allocation2 + $0x18] sm:$0xff]  ;;  %vm252_vm1 = vcmask 31744   ;;  %s228_s13 = sand.u32 1, %s1427_s16   ;;  %s1004_s22 = sshll.u32 %s1435_s18, 10 }
  0x39   : > { %s233_s8 = scalar_select %p232_p4, %s1435_s18, 1  ;;  %v244_v4 = vld [vmem:[%s1643_s2] sm:$0xff]  ;;  %v341_v7 = vld [vmem:[#allocation2 + $0x48] sm:$0xff]  ;;  %v343_v10 = vld [vmem:[#allocation2 + $0x58] sm:$0xff] }
  0x3a   : > { %247 = vperm.xlu0 %1331, %v244_v4   ;;  %v1005_v9 = vpack.c.bf16 %v341_v7, %v333_v6  ;;  %v332_v11 = vld [vmem:[#allocation2] sm:$0xff]  ;;  %v1069_v13 = vpack.c.bf16 %v343_v10, %v335_v8  ;;  %v334_v15 = vld [vmem:[#allocation2 + $0x10] sm:$0xff]  ;;  %v349_v17 = vld [vmem:[#allocation2 + $0x88] sm:$0xff]  ;;  %s992_s14 = sshll.u32 %s228_s13, 6  ;;  %s881_s18 = scalar_lea.sflag [#allocation4], %s228_s13 }
  0x3b   : > { %s1003_s7 = sshll.u32 %s233_s8, 3  ;;  %v340_v12 = vld [vmem:[#allocation2 + $0x40] sm:$0xff]  ;;  %v342_v16 = vld [vmem:[#allocation2 + $0x50] sm:$0xff]  ;;  %v357_v19 = vld [vmem:[#allocation2 + $0xc8] sm:$0xff]  ;;  %s230_s21 = scalar_lea.vmem [#allocation5], %s992_s14 }
  0x3c   : > { %s239_s29 = scalar_lea.vmem %s1641_s0, %s1003_s7  ;;  %v1007_v14 = vpack.c.bf16 %v340_v12, %v332_v11  ;;  %1006 = vmatprep.subr.bf16.mxu1 %v1005_v9  ;;  %v1071_v18 = vpack.c.bf16 %v342_v16, %v334_v15  ;;  %v351_v20 = vld [vmem:[#allocation2 + $0x98] sm:$0xff]  ;;  %v1009_v22 = vpack.c.bf16 %v357_v19, %v349_v17  ;;  %v348_v24 = vld [vmem:[#allocation2 + $0x80] sm:$0xff]  ;;  %v350_v26 = vld [vmem:[#allocation2 + $0x90] sm:$0xff]  ;;  %s897_s24 = sshll.u32 %s230_s21, 4  ;;  %s1596_s24 = int_to_ptr.vmem [resolvable:$true] %s897_s24 }
  0x3d   : > { %v242_v2 = vld [vmem:[%s239_s29] sm:$0xff]  ;;  %v359_v21 = vld [vmem:[#allocation2 + $0xd8] sm:$0xff]  ;;  %v358_v28 = vld [vmem:[#allocation2 + $0xd0] sm:$0xff]  ;;  %s1594_s8 = scalar_lea.hbm %s1645_s4, %s1004_s22  ;;  %s1361_s7 = scalar_lea.vmem %s1596_s24, 1024 }
  0x3e   : > { %v251_v5 = vcombine.high %v242_v2, %v242_v2  ;;  %v1073_v23 = vpack.c.bf16 %v359_v21, %v351_v20  ;;  %v356_v25 = vld [vmem:[#allocation2 + $0xc0] sm:$0xff]  ;;  %1008 = vmatpush1.bf16.msra.mxu1 %v1007_v14  ;;  %v365_v29 = vld [vmem:[#allocation2 + $0x108] sm:$0xff]  ;;  %v1075_v31 = vpack.c.bf16 %v358_v28, %v350_v26  ;;  %v367_v33 = vld [vmem:[#allocation2 + $0x118] sm:$0xff]  ;;  %p1362_p8 = scmp.ne.s32.totalorder %s1596_s24, %s1361_s7  ;;  %p1657_p10 = scmp.ne.s32.totalorder %s1650_s25, 0 }
  0x3f   : > { %v1011_v27 = vpack.c.bf16 %v356_v25, %v348_v24  ;;  %v373_v30 = vld [vmem:[#allocation2 + $0x148] sm:$0xff]  ;;  %1010 = vmatprep.subr.bf16.mxu1 %v1009_v22  ;;  %v375_v34 = vld [vmem:[#allocation2 + $0x158] sm:$0xff]  ;;  %v364_v35 = vld [vmem:[#allocation2 + $0x100] sm:$0xff]  ;;  %s1450_s9 = smov [#allocation5]  }
  0x40   : > { %995 = vmatprep.subr.msk.mxu0 %vm256_vm0, %v251_v5  ;;  %v1013_v32 = vpack.c.bf16 %v373_v30, %v365_v29  ;;  %v1077_v36 = vpack.c.bf16 %v375_v34, %v367_v33  ;;  %v372_v37 = vld [vmem:[#allocation2 + $0x140] sm:$0xff]  ;;  %v366_v38 = vld [vmem:[#allocation2 + $0x110] sm:$0xff]  ;;  %v381_v40 = vld [vmem:[#allocation2 + $0x188] sm:$0xff]  ;;  %p1363_p11 = pnand %p1362_p8, %p1657_p10  ;;  %s1365_s6 = sshll.u32 %s1450_s9, 4  ;;  %s1366_s6 = int_to_ptr.vmem [resolvable:$false] %s1365_s6 }
  0x41   : > { %996 = vmatpush1.msk.msra.mxu0 %vm256_vm0, %v242_v2  ;;  %v374_v39 = vld [vmem:[#allocation2 + $0x150] sm:$0xff]  ;;  %v389_v41 = vld [vmem:[#allocation2 + $0x1c8] sm:$0xff]  ;;  %v383_v42 = vld [vmem:[#allocation2 + $0x198] sm:$0xff]  ;;  %v1015_v43 = vpack.c.bf16 %v372_v37, %v364_v35  ;;  %s1367_s29 = scalar_lea.vmem %s1366_s6, 2048  ;;  %p1368_p1 = scmp.lt.s32.totalorder %s1596_s24, %s1366_s6 }
  0x42   : > { %997 = vmatmul.mubr.msk.f32.vlgmr.msra.gmra.mrb[0].mxu0 %vm252_vm1, %v243_v3  ;;  %1070 = vmatprep.subr.bf16.mxu0 %v1069_v13  ;;  %v1079_v44 = vpack.c.bf16 %v374_v39, %v366_v38  ;;  %v391_v45 = vld [vmem:[#allocation2 + $0x1d8] sm:$0xff]  ;;  %v380_v46 = vld [vmem:[#allocation2 + $0x180] sm:$0xff]  ;;  %v1017_v48 = vpack.c.bf16 %v389_v41, %v381_v40  ;;  %v382_v50 = vld [vmem:[#allocation2 + $0x190] sm:$0xff]  ;;  %p1364_p13 = pneg %p1363_p11  ;;  %p1369_p3 = scmp.lt.s32.totalorder %s1367_s29, %s1361_s7 }
  0x43   : > { %1072 = vmatpush1.bf16.msra.mxu0 %v1071_v18  ;;  %1012 = vmatpush1.bf16.msra.mxu1 %v1011_v27  ;;  %v388_v47 = vld [vmem:[#allocation2 + $0x1c0] sm:$0xff]  ;;  %v1081_v49 = vpack.c.bf16 %v391_v45, %v383_v42  ;;  %v390_v51 = vld [vmem:[#allocation2 + $0x1d0] sm:$0xff]  ;;  %v397_v52 = vld [vmem:[#allocation2 + $0x208] sm:$0xff] }
  0x44   : > { %1074 = vmatprep.subr.bf16.mxu0 %v1073_v23  ;;  %1014 = vmatprep.subr.bf16.mxu1 %v1013_v32  ;;  %v405_v53 = vld [vmem:[#allocation2 + $0x248] sm:$0xff]  ;;  %v399_v54 = vld [vmem:[#allocation2 + $0x218] sm:$0xff]  ;;  %v1019_v56 = vpack.c.bf16 %v388_v47, %v380_v46  ;;  %v1083_v57 = vpack.c.bf16 %v390_v51, %v382_v50  ;;  %v396_v58 = vld [vmem:[#allocation2 + $0x200] sm:$0xff]  ;;  %p1370_p5 = por %p1369_p3, %p1368_p1 }
  0x45   : > { %v407_v55 = vld [vmem:[#allocation2 + $0x258] sm:$0xff]  ;;  %v404_v59 = vld [vmem:[#allocation2 + $0x240] sm:$0xff]  ;;  %v1021_v60 = vpack.c.bf16 %v405_v53, %v397_v52  ;;  %v398_v62 = vld [vmem:[#allocation2 + $0x210] sm:$0xff] }
  0x46   : > { %v1085_v61 = vpack.c.bf16 %v407_v55, %v399_v54  ;;  %v406_v63 = vld [vmem:[#allocation2 + $0x250] sm:$0xff]  ;;  %v413_v0 = vld [vmem:[#allocation2 + $0x288] sm:$0xff]  ;;  %v415_v2 = vld [vmem:[#allocation2 + $0x298] sm:$0xff]  ;;  %v1023_v4 = vpack.c.bf16 %v404_v59, %v396_v58  ;;  %p1371_p6 = pnand %p1370_p5, %p1364_p13 }
  0x47   : > { %1076 = vmatpush1.bf16.msra.mxu0 %v1075_v31  ;;  %1016 = vmatpush1.bf16.msra.mxu1 %v1015_v43  ;;  %v421_v1 = vld [vmem:[#allocation2 + $0x2c8] sm:$0xff]  ;;  %v423_v3 = vld [vmem:[#allocation2 + $0x2d8] sm:$0xff]  ;;  %v1087_v5 = vpack.c.bf16 %v406_v63, %v398_v62  ;;  %v412_v6 = vld [vmem:[#allocation2 + $0x280] sm:$0xff] }
  0x48   : > { %1078 = vmatprep.subr.bf16.mxu0 %v1077_v36  ;;  %1018 = vmatprep.subr.bf16.mxu1 %v1017_v48  ;;  %v420_v7 = vld [vmem:[#allocation2 + $0x2c0] sm:$0xff]  ;;  %v1025_v8 = vpack.c.bf16 %v421_v1, %v413_v0  ;;  %v1089_v9 = vpack.c.bf16 %v423_v3, %v415_v2  ;;  %v414_v10 = vld [vmem:[#allocation2 + $0x290] sm:$0xff]  ;;  %v429_v12 = vld [vmem:[#allocation2 + $0x308] sm:$0xff] }
  0x49   : > { %v422_v11 = vld [vmem:[#allocation2 + $0x2d0] sm:$0xff]  ;;  %v437_v13 = vld [vmem:[#allocation2 + $0x348] sm:$0xff]  ;;  %v431_v14 = vld [vmem:[#allocation2 + $0x318] sm:$0xff]  ;;  %v1027_v16 = vpack.c.bf16 %v420_v7, %v412_v6 }
  0x4a   : > { %v439_v15 = vld [vmem:[#allocation2 + $0x358] sm:$0xff]  ;;  %v1091_v17 = vpack.c.bf16 %v422_v11, %v414_v10  ;;  %v428_v18 = vld [vmem:[#allocation2 + $0x300] sm:$0xff]  ;;  %v1029_v20 = vpack.c.bf16 %v437_v13, %v429_v12  ;;  %v430_v22 = vld [vmem:[#allocation2 + $0x310] sm:$0xff] }
  0x4b   : > { %1080 = vmatpush1.bf16.msra.mxu0 %v1079_v44  ;;  %1020 = vmatpush1.bf16.msra.mxu1 %v1019_v56  ;;  %v436_v19 = vld [vmem:[#allocation2 + $0x340] sm:$0xff]  ;;  %v1093_v21 = vpack.c.bf16 %v439_v15, %v431_v14  ;;  %v438_v23 = vld [vmem:[#allocation2 + $0x350] sm:$0xff]  ;;  %v445_v24 = vld [vmem:[#allocation2 + $0x388] sm:$0xff] }
  0x4c   : > { %1082 = vmatprep.subr.bf16.mxu0 %v1081_v49  ;;  %1022 = vmatprep.subr.bf16.mxu1 %v1021_v60  ;;  %v453_v25 = vld [vmem:[#allocation2 + $0x3c8] sm:$0xff]  ;;  %v447_v26 = vld [vmem:[#allocation2 + $0x398] sm:$0xff]  ;;  %v1031_v28 = vpack.c.bf16 %v436_v19, %v428_v18  ;;  %v1095_v29 = vpack.c.bf16 %v438_v23, %v430_v22  ;;  %v444_v30 = vld [vmem:[#allocation2 + $0x380] sm:$0xff] }
  0x4d   : > { %v455_v27 = vld [vmem:[#allocation2 + $0x3d8] sm:$0xff]  ;;  %v452_v31 = vld [vmem:[#allocation2 + $0x3c0] sm:$0xff]  ;;  %v1033_v32 = vpack.c.bf16 %v453_v25, %v445_v24  ;;  %v446_v34 = vld [vmem:[#allocation2 + $0x390] sm:$0xff] }
  0x4e   : > { %v1097_v33 = vpack.c.bf16 %v455_v27, %v447_v26  ;;  %v454_v35 = vld [vmem:[#allocation2 + $0x3d0] sm:$0xff]  ;;  %v461_v36 = vld [vmem:[#allocation2 + $0x408] sm:$0xff]  ;;  %v463_v38 = vld [vmem:[#allocation2 + $0x418] sm:$0xff]  ;;  %v1035_v40 = vpack.c.bf16 %v452_v31, %v444_v30 }
  0x4f   : > { %1084 = vmatpush1.bf16.msra.mxu0 %v1083_v57  ;;  %1024 = vmatpush1.bf16.msra.mxu1 %v1023_v4  ;;  %v469_v37 = vld [vmem:[#allocation2 + $0x448] sm:$0xff]  ;;  %v471_v39 = vld [vmem:[#allocation2 + $0x458] sm:$0xff]  ;;  %v1099_v41 = vpack.c.bf16 %v454_v35, %v446_v34  ;;  %v460_v42 = vld [vmem:[#allocation2 + $0x400] sm:$0xff] }
  0x50   : > { %1086 = vmatprep.subr.bf16.mxu0 %v1085_v61  ;;  %1026 = vmatprep.subr.bf16.mxu1 %v1025_v8  ;;  %v468_v43 = vld [vmem:[#allocation2 + $0x440] sm:$0xff]  ;;  %v1037_v44 = vpack.c.bf16 %v469_v37, %v461_v36  ;;  %v1101_v45 = vpack.c.bf16 %v471_v39, %v463_v38  ;;  %v462_v46 = vld [vmem:[#allocation2 + $0x410] sm:$0xff]  ;;  %v477_v48 = vld [vmem:[#allocation2 + $0x488] sm:$0xff] }
  0x51   : > { %v470_v47 = vld [vmem:[#allocation2 + $0x450] sm:$0xff]  ;;  %v485_v49 = vld [vmem:[#allocation2 + $0x4c8] sm:$0xff]  ;;  %v479_v50 = vld [vmem:[#allocation2 + $0x498] sm:$0xff]  ;;  %v1039_v52 = vpack.c.bf16 %v468_v43, %v460_v42 }
  0x52   : > { %v487_v51 = vld [vmem:[#allocation2 + $0x4d8] sm:$0xff]  ;;  %v1103_v53 = vpack.c.bf16 %v470_v47, %v462_v46  ;;  %v476_v54 = vld [vmem:[#allocation2 + $0x480] sm:$0xff]  ;;  %v1041_v56 = vpack.c.bf16 %v485_v49, %v477_v48  ;;  %v478_v58 = vld [vmem:[#allocation2 + $0x490] sm:$0xff] }
  0x53   : > { %1088 = vmatpush1.bf16.msra.mxu0 %v1087_v5  ;;  %1028 = vmatpush1.bf16.msra.mxu1 %v1027_v16  ;;  %v484_v55 = vld [vmem:[#allocation2 + $0x4c0] sm:$0xff]  ;;  %v1105_v57 = vpack.c.bf16 %v487_v51, %v479_v50  ;;  %v486_v59 = vld [vmem:[#allocation2 + $0x4d0] sm:$0xff]  ;;  %v493_v60 = vld [vmem:[#allocation2 + $0x508] sm:$0xff] }
  0x54   : > { %1090 = vmatprep.subr.bf16.mxu0 %v1089_v9  ;;  %1030 = vmatprep.subr.bf16.mxu1 %v1029_v20  ;;  %v501_v61 = vld [vmem:[#allocation2 + $0x548] sm:$0xff]  ;;  %v495_v62 = vld [vmem:[#allocation2 + $0x518] sm:$0xff]  ;;  %v1043_v0 = vpack.c.bf16 %v484_v55, %v476_v54  ;;  %v1107_v1 = vpack.c.bf16 %v486_v59, %v478_v58  ;;  %v492_v2 = vld [vmem:[#allocation2 + $0x500] sm:$0xff] }
  0x55   : > { %v503_v63 = vld [vmem:[#allocation2 + $0x558] sm:$0xff]  ;;  %v500_v3 = vld [vmem:[#allocation2 + $0x540] sm:$0xff]  ;;  %v1045_v4 = vpack.c.bf16 %v501_v61, %v493_v60  ;;  %v494_v6 = vld [vmem:[#allocation2 + $0x510] sm:$0xff] }
  0x56   : > { %v1109_v5 = vpack.c.bf16 %v503_v63, %v495_v62  ;;  %v502_v7 = vld [vmem:[#allocation2 + $0x550] sm:$0xff]  ;;  %v509_v8 = vld [vmem:[#allocation2 + $0x588] sm:$0xff]  ;;  %v511_v10 = vld [vmem:[#allocation2 + $0x598] sm:$0xff]  ;;  %v1047_v12 = vpack.c.bf16 %v500_v3, %v492_v2 }
  0x57   : > { %1092 = vmatpush1.bf16.msra.mxu0 %v1091_v17  ;;  %1032 = vmatpush1.bf16.msra.mxu1 %v1031_v28  ;;  %v517_v9 = vld [vmem:[#allocation2 + $0x5c8] sm:$0xff]  ;;  %v519_v11 = vld [vmem:[#allocation2 + $0x5d8] sm:$0xff]  ;;  %v1111_v13 = vpack.c.bf16 %v502_v7, %v494_v6  ;;  %v508_v14 = vld [vmem:[#allocation2 + $0x580] sm:$0xff] }
  0x58   : > { %1094 = vmatprep.subr.bf16.mxu0 %v1093_v21  ;;  %1034 = vmatprep.subr.bf16.mxu1 %v1033_v32  ;;  %v516_v15 = vld [vmem:[#allocation2 + $0x5c0] sm:$0xff]  ;;  %v1049_v16 = vpack.c.bf16 %v517_v9, %v509_v8  ;;  %v1113_v17 = vpack.c.bf16 %v519_v11, %v511_v10  ;;  %v510_v18 = vld [vmem:[#allocation2 + $0x590] sm:$0xff]  ;;  %v525_v20 = vld [vmem:[#allocation2 + $0x608] sm:$0xff] }
  0x59   : > { %v518_v19 = vld [vmem:[#allocation2 + $0x5d0] sm:$0xff]  ;;  %v533_v21 = vld [vmem:[#allocation2 + $0x648] sm:$0xff]  ;;  %v527_v22 = vld [vmem:[#allocation2 + $0x618] sm:$0xff]  ;;  %v1051_v24 = vpack.c.bf16 %v516_v15, %v508_v14 }
  0x5a   : > { %v535_v23 = vld [vmem:[#allocation2 + $0x658] sm:$0xff]  ;;  %v1115_v25 = vpack.c.bf16 %v518_v19, %v510_v18  ;;  %v524_v26 = vld [vmem:[#allocation2 + $0x600] sm:$0xff]  ;;  %v1053_v28 = vpack.c.bf16 %v533_v21, %v525_v20  ;;  %v526_v30 = vld [vmem:[#allocation2 + $0x610] sm:$0xff] }
  0x5b   : > { %1096 = vmatpush1.bf16.msra.mxu0 %v1095_v29  ;;  %1036 = vmatpush1.bf16.msra.mxu1 %v1035_v40  ;;  %v532_v27 = vld [vmem:[#allocation2 + $0x640] sm:$0xff]  ;;  %v1117_v29 = vpack.c.bf16 %v535_v23, %v527_v22  ;;  %v534_v31 = vld [vmem:[#allocation2 + $0x650] sm:$0xff]  ;;  %v541_v32 = vld [vmem:[#allocation2 + $0x688] sm:$0xff] }
  0x5c   : > { %1098 = vmatprep.subr.bf16.mxu0 %v1097_v33  ;;  %1038 = vmatprep.subr.bf16.mxu1 %v1037_v44  ;;  %v549_v33 = vld [vmem:[#allocation2 + $0x6c8] sm:$0xff]  ;;  %v543_v34 = vld [vmem:[#allocation2 + $0x698] sm:$0xff]  ;;  %v1055_v36 = vpack.c.bf16 %v532_v27, %v524_v26  ;;  %v1119_v37 = vpack.c.bf16 %v534_v31, %v526_v30  ;;  %v540_v38 = vld [vmem:[#allocation2 + $0x680] sm:$0xff] }
  0x5d   : > { %v551_v35 = vld [vmem:[#allocation2 + $0x6d8] sm:$0xff]  ;;  %v548_v39 = vld [vmem:[#allocation2 + $0x6c0] sm:$0xff]  ;;  %v1057_v40 = vpack.c.bf16 %v549_v33, %v541_v32  ;;  %v542_v42 = vld [vmem:[#allocation2 + $0x690] sm:$0xff] }
  0x5e   : > { %v550_v43 = vld [vmem:[#allocation2 + $0x6d0] sm:$0xff]  ;;  %v557_v44 = vld [vmem:[#allocation2 + $0x708] sm:$0xff]  ;;  %v559_v46 = vld [vmem:[#allocation2 + $0x718] sm:$0xff]  ;;  %v1059_v48 = vpack.c.bf16 %v548_v39, %v540_v38 }
  0x5f   : > { %1100 = vmatpush1.bf16.msra.mxu0 %v1099_v41  ;;  %1040 = vmatpush1.bf16.msra.mxu1 %v1039_v52  ;;  %v1121_v41 = vpack.c.bf16 %v551_v35, %v543_v34  ;;  %v567_v47 = vld [vmem:[#allocation2 + $0x758] sm:$0xff]  ;;  %v1123_v49 = vpack.c.bf16 %v550_v43, %v542_v42  ;;  %v556_v50 = vld [vmem:[#allocation2 + $0x700] sm:$0xff]  ;;  %v558_v54 = vld [vmem:[#allocation2 + $0x710] sm:$0xff] }
  0x60   : > { %1102 = vmatprep.subr.bf16.mxu0 %v1101_v45  ;;  %1042 = vmatprep.subr.bf16.mxu1 %v1041_v56  ;;  %v565_v45 = vld [vmem:[#allocation2 + $0x748] sm:$0xff]  ;;  %v1125_v52 = vpack.c.bf16 %v567_v47, %v559_v46  ;;  %v566_v55 = vld [vmem:[#allocation2 + $0x750] sm:$0xff]  ;;  %v575_v61 = vld [vmem:[#allocation2 + $0x798] sm:$0xff] }
  0x61   : > { %v1061_v51 = vpack.c.bf16 %v565_v45, %v557_v44  ;;  %v573_v56 = vld [vmem:[#allocation2 + $0x788] sm:$0xff]  ;;  %v1127_v59 = vpack.c.bf16 %v566_v55, %v558_v54  ;;  %v583_v62 = vld [vmem:[#allocation2 + $0x7d8] sm:$0xff]  ;;  %v574_v2 = vld [vmem:[#allocation2 + $0x790] sm:$0xff] }
  0x62   : > { %v1129_v63 = vpack.c.bf16 %v583_v62, %v575_v61  ;;  %v337_v6 = vld [vmem:[#allocation2 + $0x28] sm:$0xff]  ;;  %v339_v8 = vld [vmem:[#allocation2 + $0x38] sm:$0xff]  ;;  %v344_v14 = vld [vmem:[#allocation2 + $0x60] sm:$0xff] }
  0x63   : > { %1104 = vmatpush1.bf16.msra.mxu0 %v1103_v53  ;;  %1044 = vmatpush1.bf16.msra.mxu1 %v1043_v0  ;;  %v564_v53 = vld [vmem:[#allocation2 + $0x740] sm:$0xff]  ;;  %v345_v7 = vld [vmem:[#allocation2 + $0x68] sm:$0xff]  ;;  %v347_v10 = vld [vmem:[#allocation2 + $0x78] sm:$0xff] }
  0x64   : > { %1106 = vmatprep.subr.bf16.mxu0 %v1105_v57  ;;  %1046 = vmatprep.subr.bf16.mxu1 %v1045_v4  ;;  %v581_v57 = vld [vmem:[#allocation2 + $0x7c8] sm:$0xff]  ;;  %v1063_v58 = vpack.c.bf16 %v564_v53, %v556_v50  ;;  %v572_v0 = vld [vmem:[#allocation2 + $0x780] sm:$0xff]  ;;  %v582_v4 = vld [vmem:[#allocation2 + $0x7d0] sm:$0xff]  ;;  %v1133_v9 = vpack.c.bf16 %v345_v7, %v337_v6  ;;  %v1197_v11 = vpack.c.bf16 %v347_v10, %v339_v8 }
  0x65   : > { %v1065_v60 = vpack.c.bf16 %v581_v57, %v573_v56  ;;  %v338_v15 = vld [vmem:[#allocation2 + $0x30] sm:$0xff]  ;;  %v353_v18 = vld [vmem:[#allocation2 + $0xa8] sm:$0xff]  ;;  %v355_v21 = vld [vmem:[#allocation2 + $0xb8] sm:$0xff] }
  0x66   : > { %v361_v20 = vld [vmem:[#allocation2 + $0xe8] sm:$0xff]  ;;  %v363_v22 = vld [vmem:[#allocation2 + $0xf8] sm:$0xff]  ;;  %v352_v26 = vld [vmem:[#allocation2 + $0xa0] sm:$0xff] }
  0x67   : > { %1108 = vmatpush1.bf16.msra.mxu0 %v1107_v1  ;;  %1048 = vmatpush1.bf16.msra.mxu1 %v1047_v12  ;;  %v580_v1 = vld [vmem:[#allocation2 + $0x7c0] sm:$0xff]  ;;  %v362_v30 = vld [vmem:[#allocation2 + $0xf0] sm:$0xff]  ;;  %v369_v31 = vld [vmem:[#allocation2 + $0x128] sm:$0xff]  ;;  %v1137_v32 = vpack.c.bf16 %v361_v20, %v353_v18  ;;  %v1201_v33 = vpack.c.bf16 %v363_v22, %v355_v21 }
  0x68   : > { %1110 = vmatprep.subr.bf16.mxu0 %v1109_v5  ;;  %1050 = vmatprep.subr.bf16.mxu1 %v1049_v16  ;;  %v1067_v3 = vpack.c.bf16 %v580_v1, %v572_v0  ;;  %v1131_v5 = vpack.c.bf16 %v582_v4, %v574_v2  ;;  %v336_v12 = vld [vmem:[#allocation2 + $0x20] sm:$0xff]  ;;  %v346_v16 = vld [vmem:[#allocation2 + $0x70] sm:$0xff]  ;;  %v377_v34 = vld [vmem:[#allocation2 + $0x168] sm:$0xff] }
  0x69   : > { %v360_v27 = vld [vmem:[#allocation2 + $0xe0] sm:$0xff]  ;;  %v371_v35 = vld [vmem:[#allocation2 + $0x138] sm:$0xff]  ;;  %v370_v43 = vld [vmem:[#allocation2 + $0x130] sm:$0xff] }
  0x6a   : > { %v368_v39 = vld [vmem:[#allocation2 + $0x120] sm:$0xff]  ;;  %v378_v44 = vld [vmem:[#allocation2 + $0x170] sm:$0xff]  ;;  %v385_v45 = vld [vmem:[#allocation2 + $0x1a8] sm:$0xff] }
  0x6b   : > { %1112 = vmatpush1.bf16.msra.mxu0 %v1111_v13  ;;  %1052 = vmatpush1.bf16.msra.mxu1 %v1051_v24  ;;  %v1135_v24 = vpack.c.bf16 %v344_v14, %v336_v12  ;;  %v393_v46 = vld [vmem:[#allocation2 + $0x1e8] sm:$0xff]  ;;  %v387_v47 = vld [vmem:[#allocation2 + $0x1b8] sm:$0xff]  ;;  %v1207_v50 = vpack.c.bf16 %v378_v44, %v370_v43  ;;  %v386_v55 = vld [vmem:[#allocation2 + $0x1b0] sm:$0xff] }
  0x6c   : > { %1114 = vmatprep.subr.bf16.mxu0 %v1113_v17  ;;  %1054 = vmatprep.subr.bf16.mxu1 %v1053_v28  ;;  %v1145_v53 = vpack.c.bf16 %v393_v46, %v385_v45  ;;  %v394_v56 = vld [vmem:[#allocation2 + $0x1f0] sm:$0xff]  ;;  %v401_v57 = vld [vmem:[#allocation2 + $0x228] sm:$0xff]  ;;  %v408_v0 = vld [vmem:[#allocation2 + $0x260] sm:$0xff] }
  0x6d   : > { %v1211_v62 = vpack.c.bf16 %v394_v56, %v386_v55  ;;  %v410_v4 = vld [vmem:[#allocation2 + $0x270] sm:$0xff]  ;;  %v425_v6 = vld [vmem:[#allocation2 + $0x2e8] sm:$0xff]  ;;  %v419_v7 = vld [vmem:[#allocation2 + $0x2b8] sm:$0xff] }
  0x6e   : > { %v427_v8 = vld [vmem:[#allocation2 + $0x2f8] sm:$0xff]  ;;  %v424_v12 = vld [vmem:[#allocation2 + $0x2e0] sm:$0xff]  ;;  %v441_v18 = vld [vmem:[#allocation2 + $0x368] sm:$0xff] }
  0x6f   : > { %1116 = vmatpush1.bf16.msra.mxu0 %v1115_v25  ;;  %1056 = vmatpush1.bf16.msra.mxu1 %v1055_v36  ;;  %v1199_v25 = vpack.c.bf16 %v346_v16, %v338_v15  ;;  %v379_v36 = vld [vmem:[#allocation2 + $0x178] sm:$0xff]  ;;  %v1217_v14 = vpack.c.bf16 %v427_v8, %v419_v7  ;;  %v418_v15 = vld [vmem:[#allocation2 + $0x2b0] sm:$0xff]  ;;  %v473_v43 = vld [vmem:[#allocation2 + $0x468] sm:$0xff] }
  0x70   : > { %1118 = vmatprep.subr.bf16.mxu0 %v1117_v29  ;;  %1058 = vmatprep.subr.bf16.mxu1 %v1057_v40  ;;  %v354_v29 = vld [vmem:[#allocation2 + $0xb0] sm:$0xff]  ;;  %v376_v40 = vld [vmem:[#allocation2 + $0x160] sm:$0xff]  ;;  %v1205_v42 = vpack.c.bf16 %v379_v36, %v371_v35  ;;  %v443_v20 = vld [vmem:[#allocation2 + $0x378] sm:$0xff] }
  0x71   : > { %v1203_v38 = vpack.c.bf16 %v362_v30, %v354_v29  ;;  %v426_v16 = vld [vmem:[#allocation2 + $0x2f0] sm:$0xff]  ;;  %v449_v30 = vld [vmem:[#allocation2 + $0x3a8] sm:$0xff]  ;;  %v448_v36 = vld [vmem:[#allocation2 + $0x3a0] sm:$0xff] }
  0x72   : > { %v1219_v22 = vpack.c.bf16 %v426_v16, %v418_v15  ;;  %v442_v29 = vld [vmem:[#allocation2 + $0x370] sm:$0xff]  ;;  %v467_v44 = vld [vmem:[#allocation2 + $0x438] sm:$0xff]  ;;  %v489_v55 = vld [vmem:[#allocation2 + $0x4e8] sm:$0xff] }
  0x73   : > { %1120 = vmatpush1.bf16.msra.mxu0 %v1119_v37  ;;  %1060 = vmatpush1.bf16.msra.mxu1 %v1059_v48  ;;  %v1139_v37 = vpack.c.bf16 %v360_v27, %v352_v26  ;;  %v395_v48 = vld [vmem:[#allocation2 + $0x1f8] sm:$0xff]  ;;  %v434_v27 = vld [vmem:[#allocation2 + $0x330] sm:$0xff]  ;;  %v496_v8 = vld [vmem:[#allocation2 + $0x520] sm:$0xff] }
  0x74   : > { %1122 = vmatprep.subr.bf16.mxu0 %v1121_v41  ;;  %1062 = vmatprep.subr.bf16.mxu1 %v1061_v51  ;;  %v1141_v41 = vpack.c.bf16 %v377_v34, %v369_v31  ;;  %v384_v51 = vld [vmem:[#allocation2 + $0x1a0] sm:$0xff]  ;;  %v1209_v54 = vpack.c.bf16 %v395_v48, %v387_v47  ;;  %v457_v31 = vld [vmem:[#allocation2 + $0x3e8] sm:$0xff]  ;;  %v1223_v35 = vpack.c.bf16 %v442_v29, %v434_v27  ;;  %v475_v45 = vld [vmem:[#allocation2 + $0x478] sm:$0xff] }
  0x75   : > { %v464_v48 = vld [vmem:[#allocation2 + $0x420] sm:$0xff]  ;;  %v483_v56 = vld [vmem:[#allocation2 + $0x4b8] sm:$0xff]  ;;  %v521_v15 = vld [vmem:[#allocation2 + $0x5e8] sm:$0xff] }
  0x76   : > { %v515_v16 = vld [vmem:[#allocation2 + $0x5b8] sm:$0xff]  ;;  %v537_v27 = vld [vmem:[#allocation2 + $0x668] sm:$0xff] }
  0x77   : > { %1124 = vmatpush1.bf16.msra.mxu0 %v1123_v49  ;;  %1064 = vmatpush1.bf16.msra.mxu1 %v1063_v58  ;;  %v1143_v49 = vpack.c.bf16 %v376_v40, %v368_v39  ;;  %v409_v58 = vld [vmem:[#allocation2 + $0x268] sm:$0xff]  ;;  %v450_v40 = vld [vmem:[#allocation2 + $0x3b0] sm:$0xff]  ;;  %v531_v29 = vld [vmem:[#allocation2 + $0x638] sm:$0xff] }
  0x78   : > { %1126 = vmatprep.subr.bf16.mxu0 %v1125_v52  ;;  %1066 = vmatprep.subr.bf16.mxu1 %v1065_v60  ;;  %v392_v52 = vld [vmem:[#allocation2 + $0x1e0] sm:$0xff]  ;;  %v411_v60 = vld [vmem:[#allocation2 + $0x278] sm:$0xff]  ;;  %v1149_v1 = vpack.c.bf16 %v409_v58, %v401_v57 }
  0x79   : > { %v1147_v61 = vpack.c.bf16 %v392_v52, %v384_v51  ;;  %v1229_v51 = vpack.c.bf16 %v475_v45, %v467_v44  ;;  %v466_v52 = vld [vmem:[#allocation2 + $0x430] sm:$0xff]  ;;  %v491_v57 = vld [vmem:[#allocation2 + $0x4f8] sm:$0xff]  ;;  %v544_v45 = vld [vmem:[#allocation2 + $0x6a0] sm:$0xff] }
  0x7b   : > { %1128 = vmatpush1.bf16.msra.mxu0 %v1127_v59  ;;  %1068 = vmatpush1.bf16.msra.mxu1 %v1067_v3  ;;  %v403_v59 = vld [vmem:[#allocation2 + $0x238] sm:$0xff]  ;;  %v402_v3 = vld [vmem:[#allocation2 + $0x230] sm:$0xff] }
  0x7c   : > { %1130 = vmatprep.subr.bf16.mxu0 %v1129_v63  ;;  %1134 = vmatprep.subr.bf16.mxu1 %v1133_v9  ;;  %v400_v63 = vld [vmem:[#allocation2 + $0x220] sm:$0xff]  ;;  %v1213_v2 = vpack.c.bf16 %v411_v60, %v403_v59  ;;  %v1215_v10 = vpack.c.bf16 %v410_v4, %v402_v3  ;;  %v505_v3 = vld [vmem:[#allocation2 + $0x568] sm:$0xff]  ;;  %v499_v4 = vld [vmem:[#allocation2 + $0x538] sm:$0xff] }
  0x7d   : > { %v1151_v9 = vpack.c.bf16 %v408_v0, %v400_v63  ;;  %v480_v60 = vld [vmem:[#allocation2 + $0x4a0] sm:$0xff]  ;;  %v1233_v63 = vpack.c.bf16 %v491_v57, %v483_v56  ;;  %v482_v0 = vld [vmem:[#allocation2 + $0x4b0] sm:$0xff] }
  0x7e   : > { %v560_v57 = vld [vmem:[#allocation2 + $0x720] sm:$0xff] }
  0x7f   : > { %1132 = vmatpush1.bf16.msra.mxu0 %v1131_v5  ;;  %v417_v5 = vld [vmem:[#allocation2 + $0x2a8] sm:$0xff] }
  0x80   : > { %1198 = vmatprep.subr.bf16.mxu0 %v1197_v11  ;;  %v416_v11 = vld [vmem:[#allocation2 + $0x2a0] sm:$0xff] }
  0x81   : > { %v1155_v21 = vpack.c.bf16 %v424_v12, %v416_v11  ;;  %v498_v12 = vld [vmem:[#allocation2 + $0x530] sm:$0xff] }
  0xb9   : > { %v248_v13 = vpop.permute.xlu0 %247 }
 0x115   : > { %v327_v17 = vpop.f32.mrb[0].mxu0 }
 0x116   : > { %v329_v19 = vpop.f32.mrb[1].mxu0  ;;  %v1583_v28 = vadd.f32 %v327_v17, %v248_v13  ;;  %v433_v17 = vld [vmem:[#allocation2 + $0x328] sm:$0xff] }
 0x117   : > { %v330_v23 = vadd.f32 %v329_v19, %v248_v13  ;;  %v1153_v13 = vpack.c.bf16 %v425_v6, %v417_v5  ;;  %v435_v19 = vld [vmem:[#allocation2 + $0x338] sm:$0xff] }
 0x118   : > { %v1221_v26 = vpack.c.bf16 %v443_v20, %v435_v19  ;;  %v507_v5 = vld [vmem:[#allocation2 + $0x578] sm:$0xff]  ;;  %v512_v20 = vld [vmem:[#allocation2 + $0x5a0] sm:$0xff] }
 0x119   : > { %652 = vmatprep.mubr.f32.mxu1 %v330_v23  ;;  %723 = vmatprep.mubr.f32.mxu0 %v330_v23  ;;  %v1237_v11 = vpack.c.bf16 %v507_v5, %v499_v4  ;;  %v576_v5 = vld [vmem:[#allocation2 + $0x7a0] sm:$0xff] }
 0x11a   : > { %653 = vmatmul.mubr.f32.vlgmr.msra.gmra.mrb[0].mxu1 %v1583_v28  ;;  %724 = vmatmul.mubr.f32.vlgmr.msra.gmra.mrb[2].mxu0 %v1583_v28 }
 0x11b   : > { %1136 = vmatpush1.bf16.msra.mxu1 %v1135_v24  ;;  %1200 = vmatpush1.bf16.msra.mxu0 %v1199_v25  ;;  %v440_v24 = vld [vmem:[#allocation2 + $0x360] sm:$0xff]  ;;  %v1157_v25 = vpack.c.bf16 %v441_v18, %v433_v17  ;;  %v523_v17 = vld [vmem:[#allocation2 + $0x5f8] sm:$0xff] }
 0x11c   : > { %794 = vmatprep.mubr.f32.mxu1 %v330_v23  ;;  %865 = vmatprep.mubr.f32.mxu0 %v330_v23  ;;  %v432_v23 = vld [vmem:[#allocation2 + $0x320] sm:$0xff] }
 0x11d   : > { %1138 = vmatprep.subr.bf16.mxu1 %v1137_v32  ;;  %1202 = vmatprep.subr.bf16.mxu0 %v1201_v33  ;;  %v451_v32 = vld [vmem:[#allocation2 + $0x3b8] sm:$0xff]  ;;  %v1159_v34 = vpack.c.bf16 %v440_v24, %v432_v23  ;;  %v1241_v23 = vpack.c.bf16 %v523_v17, %v515_v16  ;;  %v514_v24 = vld [vmem:[#allocation2 + $0x5b0] sm:$0xff] }
 0x11e   : > { %v459_v33 = vld [vmem:[#allocation2 + $0x3f8] sm:$0xff] }
 0x11f   : > { %1140 = vmatpush1.bf16.msra.mxu1 %v1139_v37  ;;  %1204 = vmatpush1.bf16.msra.mxu0 %v1203_v38  ;;  %v456_v37 = vld [vmem:[#allocation2 + $0x3e0] sm:$0xff]  ;;  %v1161_v38 = vpack.c.bf16 %v457_v31, %v449_v30  ;;  %v1225_v39 = vpack.c.bf16 %v459_v33, %v451_v32  ;;  %v539_v30 = vld [vmem:[#allocation2 + $0x678] sm:$0xff] }
 0x120   : > { %1142 = vmatprep.subr.bf16.mxu1 %v1141_v41  ;;  %1206 = vmatprep.subr.bf16.mxu0 %v1205_v42  ;;  %v458_v41 = vld [vmem:[#allocation2 + $0x3f0] sm:$0xff]  ;;  %v465_v42 = vld [vmem:[#allocation2 + $0x428] sm:$0xff]  ;;  %v1163_v46 = vpack.c.bf16 %v456_v37, %v448_v36  ;;  %v528_v33 = vld [vmem:[#allocation2 + $0x620] sm:$0xff]  ;;  %v1245_v36 = vpack.c.bf16 %v539_v30, %v531_v29 }
 0x121   : > { %v1227_v47 = vpack.c.bf16 %v458_v41, %v450_v40  ;;  %v530_v37 = vld [vmem:[#allocation2 + $0x630] sm:$0xff]  ;;  %v553_v40 = vld [vmem:[#allocation2 + $0x6e8] sm:$0xff]  ;;  %v547_v41 = vld [vmem:[#allocation2 + $0x6b8] sm:$0xff] }
 0x123   : > { %1144 = vmatpush1.bf16.msra.mxu1 %v1143_v49  ;;  %1208 = vmatpush1.bf16.msra.mxu0 %v1207_v50  ;;  %v472_v49 = vld [vmem:[#allocation2 + $0x460] sm:$0xff]  ;;  %v1165_v50 = vpack.c.bf16 %v473_v43, %v465_v42  ;;  %v555_v42 = vld [vmem:[#allocation2 + $0x6f8] sm:$0xff] }
 0x124   : > { %1146 = vmatprep.subr.bf16.mxu1 %v1145_v53  ;;  %1210 = vmatprep.subr.bf16.mxu0 %v1209_v54  ;;  %v474_v53 = vld [vmem:[#allocation2 + $0x470] sm:$0xff]  ;;  %v481_v54 = vld [vmem:[#allocation2 + $0x4a8] sm:$0xff]  ;;  %v1167_v58 = vpack.c.bf16 %v472_v49, %v464_v48  ;;  %v1249_v48 = vpack.c.bf16 %v555_v42, %v547_v41 }
 0x125   : > { %v1231_v59 = vpack.c.bf16 %v474_v53, %v466_v52  ;;  %v546_v49 = vld [vmem:[#allocation2 + $0x6b0] sm:$0xff]  ;;  %v569_v52 = vld [vmem:[#allocation2 + $0x768] sm:$0xff]  ;;  %v563_v53 = vld [vmem:[#allocation2 + $0x738] sm:$0xff] }
 0x127   : > { %1148 = vmatpush1.bf16.msra.mxu1 %v1147_v61  ;;  %1212 = vmatpush1.bf16.msra.mxu0 %v1211_v62  ;;  %v488_v61 = vld [vmem:[#allocation2 + $0x4e0] sm:$0xff]  ;;  %v1169_v62 = vpack.c.bf16 %v489_v55, %v481_v54  ;;  %v571_v54 = vld [vmem:[#allocation2 + $0x778] sm:$0xff] }
 0x128   : > { %1150 = vmatprep.subr.bf16.mxu1 %v1149_v1  ;;  %1214 = vmatprep.subr.bf16.mxu0 %v1213_v2  ;;  %v490_v1 = vld [vmem:[#allocation2 + $0x4f0] sm:$0xff]  ;;  %v497_v2 = vld [vmem:[#allocation2 + $0x528] sm:$0xff]  ;;  %v1171_v6 = vpack.c.bf16 %v488_v61, %v480_v60  ;;  %v1253_v60 = vpack.c.bf16 %v571_v54, %v563_v53 }
 0x129   : > { %v1235_v7 = vpack.c.bf16 %v490_v1, %v482_v0  ;;  %v562_v61 = vld [vmem:[#allocation2 + $0x730] sm:$0xff]  ;;  %v585_v0 = vld [vmem:[#allocation2 + $0x7e8] sm:$0xff]  ;;  %v579_v1 = vld [vmem:[#allocation2 + $0x7b8] sm:$0xff] }
 0x12b   : > { %1152 = vmatpush1.bf16.msra.mxu1 %v1151_v9  ;;  %1216 = vmatpush1.bf16.msra.mxu0 %v1215_v10  ;;  %v504_v9 = vld [vmem:[#allocation2 + $0x560] sm:$0xff]  ;;  %v1173_v10 = vpack.c.bf16 %v505_v3, %v497_v2  ;;  %v587_v2 = vld [vmem:[#allocation2 + $0x7f8] sm:$0xff] }
 0x12c   : > { %1154 = vmatprep.subr.bf16.mxu1 %v1153_v13  ;;  %1218 = vmatprep.subr.bf16.mxu0 %v1217_v14  ;;  %v506_v13 = vld [vmem:[#allocation2 + $0x570] sm:$0xff]  ;;  %v513_v14 = vld [vmem:[#allocation2 + $0x5a8] sm:$0xff]  ;;  %v1175_v18 = vpack.c.bf16 %v504_v9, %v496_v8  ;;  %v584_v8 = vld [vmem:[#allocation2 + $0x7e0] sm:$0xff] }
 0x12d   : > { %v1239_v19 = vpack.c.bf16 %v506_v13, %v498_v12  ;;  %v578_v9 = vld [vmem:[#allocation2 + $0x7b0] sm:$0xff] }
 0x12f   : > { %1156 = vmatpush1.bf16.msra.mxu1 %v1155_v21  ;;  %1220 = vmatpush1.bf16.msra.mxu0 %v1219_v22  ;;  %v520_v21 = vld [vmem:[#allocation2 + $0x5e0] sm:$0xff]  ;;  %v1177_v22 = vpack.c.bf16 %v521_v15, %v513_v14 }
 0x130   : > { %1158 = vmatprep.subr.bf16.mxu1 %v1157_v25  ;;  %1222 = vmatprep.subr.bf16.mxu0 %v1221_v26  ;;  %v522_v25 = vld [vmem:[#allocation2 + $0x5f0] sm:$0xff]  ;;  %v529_v26 = vld [vmem:[#allocation2 + $0x628] sm:$0xff]  ;;  %v1179_v31 = vpack.c.bf16 %v520_v21, %v512_v20 }
 0x131   : > { %v1243_v32 = vpack.c.bf16 %v522_v25, %v514_v24 }
 0x133   : > { %1160 = vmatpush1.bf16.msra.mxu1 %v1159_v34  ;;  %1224 = vmatpush1.bf16.msra.mxu0 %v1223_v35  ;;  %v536_v34 = vld [vmem:[#allocation2 + $0x660] sm:$0xff]  ;;  %v1181_v35 = vpack.c.bf16 %v537_v27, %v529_v26 }
 0x134   : > { %1162 = vmatprep.subr.bf16.mxu1 %v1161_v38  ;;  %1226 = vmatprep.subr.bf16.mxu0 %v1225_v39  ;;  %v538_v38 = vld [vmem:[#allocation2 + $0x670] sm:$0xff]  ;;  %v545_v39 = vld [vmem:[#allocation2 + $0x6a8] sm:$0xff]  ;;  %v1183_v43 = vpack.c.bf16 %v536_v34, %v528_v33 }
 0x135   : > { %v1247_v44 = vpack.c.bf16 %v538_v38, %v530_v37 }
 0x137   : > { %1164 = vmatpush1.bf16.msra.mxu1 %v1163_v46  ;;  %1228 = vmatpush1.bf16.msra.mxu0 %v1227_v47  ;;  %v552_v46 = vld [vmem:[#allocation2 + $0x6e0] sm:$0xff]  ;;  %v1185_v47 = vpack.c.bf16 %v553_v40, %v545_v39 }
 0x138   : > { %1166 = vmatprep.subr.bf16.mxu1 %v1165_v50  ;;  %1230 = vmatprep.subr.bf16.mxu0 %v1229_v51  ;;  %v554_v50 = vld [vmem:[#allocation2 + $0x6f0] sm:$0xff]  ;;  %v561_v51 = vld [vmem:[#allocation2 + $0x728] sm:$0xff]  ;;  %v1187_v55 = vpack.c.bf16 %v552_v46, %v544_v45 }
 0x139   : > { %v1251_v56 = vpack.c.bf16 %v554_v50, %v546_v49 }
 0x13b   : > { %1168 = vmatpush1.bf16.msra.mxu1 %v1167_v58  ;;  %1232 = vmatpush1.bf16.msra.mxu0 %v1231_v59  ;;  %v568_v58 = vld [vmem:[#allocation2 + $0x760] sm:$0xff]  ;;  %v1189_v59 = vpack.c.bf16 %v569_v52, %v561_v51 }
 0x13c   : > { %1170 = vmatprep.subr.bf16.mxu1 %v1169_v62  ;;  %1234 = vmatprep.subr.bf16.mxu0 %v1233_v63  ;;  %v570_v62 = vld [vmem:[#allocation2 + $0x770] sm:$0xff]  ;;  %v577_v63 = vld [vmem:[#allocation2 + $0x7a8] sm:$0xff]  ;;  %v1191_v3 = vpack.c.bf16 %v568_v58, %v560_v57 }
 0x13d   : > { %v1255_v4 = vpack.c.bf16 %v570_v62, %v562_v61 }
 0x13f   : > { %1172 = vmatpush1.bf16.msra.mxu1 %v1171_v6  ;;  %1236 = vmatpush1.bf16.msra.mxu0 %v1235_v7  ;;  %v1193_v6 = vpack.c.bf16 %v585_v0, %v577_v63  ;;  %v1257_v7 = vpack.c.bf16 %v587_v2, %v579_v1 }
 0x140   : > { %1174 = vmatprep.subr.bf16.mxu1 %v1173_v10  ;;  %1238 = vmatprep.subr.bf16.mxu0 %v1237_v11  ;;  %v586_v10 = vld [vmem:[#allocation2 + $0x7f0] sm:$0xff]  ;;  %v1195_v11 = vpack.c.bf16 %v584_v8, %v576_v5 }
 0x141   : > { %v1259_v12 = vpack.c.bf16 %v586_v10, %v578_v9 }
 0x143   : > { %1176 = vmatpush1.bf16.msra.mxu1 %v1175_v18  ;;  %1240 = vmatpush1.bf16.msra.mxu0 %v1239_v19 }
 0x144   : > { %1178 = vmatprep.subr.bf16.mxu1 %v1177_v22  ;;  %1242 = vmatprep.subr.bf16.mxu0 %v1241_v23 }
 0x147   : > { %1180 = vmatpush1.bf16.msra.mxu1 %v1179_v31  ;;  %1244 = vmatpush1.bf16.msra.mxu0 %v1243_v32 }
 0x148   : > { %1182 = vmatprep.subr.bf16.mxu1 %v1181_v35  ;;  %1246 = vmatprep.subr.bf16.mxu0 %v1245_v36 }
 0x14b   : > { %1184 = vmatpush1.bf16.msra.mxu1 %v1183_v43  ;;  %1248 = vmatpush1.bf16.msra.mxu0 %v1247_v44 }
 0x14c   : > { %1186 = vmatprep.subr.bf16.mxu1 %v1185_v47  ;;  %1250 = vmatprep.subr.bf16.mxu0 %v1249_v48 }
 0x14f   : > { %1188 = vmatpush1.bf16.msra.mxu1 %v1187_v55  ;;  %1252 = vmatpush1.bf16.msra.mxu0 %v1251_v56 }
 0x150   : > { %1190 = vmatprep.subr.bf16.mxu1 %v1189_v59  ;;  %1254 = vmatprep.subr.bf16.mxu0 %v1253_v60 }
 0x153   : > { %1192 = vmatpush1.bf16.msra.mxu1 %v1191_v3  ;;  %1256 = vmatpush1.bf16.msra.mxu0 %v1255_v4 }
 0x154   : > { %1194 = vmatprep.subr.bf16.mxu1 %v1193_v6  ;;  %1258 = vmatprep.subr.bf16.mxu0 %v1257_v7 }
 0x157   : > { %1196 = vmatpush1.bf16.msra.mxu1 %v1195_v11  ;;  %1260 = vmatpush1.bf16.msra.mxu0 %v1259_v12 }
 0x15a   : > { %795 = vmatmul.mubr.f32.vlgmr.msra.gmra.mrb[2].mxu1 %v1583_v28  ;;  %866 = vmatmul.mubr.f32.vlgmr.msra.gmra.mrb[4].mxu0 %v1583_v28 }
 0x1ed   : > { %v654_v13 = vpop.f32.mrb[0].mxu1  ;;  %v725_v14 = vpop.f32.mrb[2].mxu0 }
 0x1ee   : > { %872 = vst [vmem:[%s230_s21] sm:$0xff] %v654_v13  ;;  %874 = vst [vmem:[%s230_s21 + $0x10] sm:$0xff] %v725_v14  ;;  %v656_v15 = vpop.f32.mrb[1].mxu1  ;;  %v727_v16 = vpop.f32.mrb[3].mxu0 }
 0x1ef   : > { %873 = vst [vmem:[%s230_s21 + $0x8] sm:$0xff] %v656_v15  ;;  %875 = vst [vmem:[%s230_s21 + $0x18] sm:$0xff] %v727_v16 }
 0x22d   : > { %v796_v17 = vpop.f32.mrb[2].mxu1  ;;  %v867_v18 = vpop.f32.mrb[4].mxu0 }
 0x22e   : > { %876 = vst [vmem:[%s230_s21 + $0x20] sm:$0xff] %v796_v17  ;;  %878 = vst [vmem:[%s230_s21 + $0x30] sm:$0xff] %v867_v18  ;;  %v798_v28 = vpop.f32.mrb[3].mxu1  ;;  %v869_v19 = vpop.f32.mrb[5].mxu0 }
 0x22f   : > { %877 = vst [vmem:[%s230_s21 + $0x28] sm:$0xff] %v798_v28  ;;  %879 = vst [vmem:[%s230_s21 + $0x38] sm:$0xff] %v869_v19 }
 0x230   : > { %1374 = shalt.err (!%p1371_p6)
}
 0x231   : > { %s1375_s10 = scalar_lea.hbm %s1594_s8, 1024  ;;  %s1379_s12 = scalar_lea.hbm %s1645_s4, 2048 }
 0x232   : > { %p1376_p7 = scmp.ne.s32.totalorder %s1594_s8, %s1375_s10  ;;  %p1380_p0 = scmp.lt.u32.totalorder %s1594_s8, %s1645_s4 }
 0x233   : > { %p1381_p2 = scmp.lt.u32.totalorder %s1379_s12, %s1375_s10  ;;  %p1383_p8 = scmp.lt.u32.totalorder %s1375_s10, %s1594_s8 }
 0x234   : > { %p1377_p9 = pnand %p1376_p7, %p1657_p10 }
 0x235   : > { %p1382_p4 = por %p1381_p2, %p1380_p0 }
 0x236   : > { %p1378_p12 = pneg %p1377_p9 }
 0x237   : > { %p1384_p11 = por %p1383_p8, %p1382_p4 }
 0x239   : > { %p1385_p13 = pnand %p1384_p11, %p1378_p12 }
 0x23b   : > { %1388 = shalt.err (!%p1385_p13)
}
 0x23c   : > { %1265 = dma.vmem_to_hbm [thread:$0]  (%p1657_p10), %s1596_s24, 1024, %s1594_s8, %s881_s18  }
 0x23d PF: > { %p1277_p1 = scmp.ge.s32.totalorder %s1443_s20, 2  ;;  %s909_s21 = sand.u32 1, %s1423_s15  }
 0x23e   : > { %p1658_p3 = scmp.ne.s32.totalorder %s1651_s27, 0  ;;  %s910_s22 = scalar_lea.sflag [#allocation4], %s909_s21 }
 0x240   : > { %p1272_p5 = pnand %p1277_p1, %p1658_p3 }
 0x242   : > { %1418 = dma.done.wait (!%p1272_p5), %s910_s22, 1024  }
 0x243   : > { %1420 = vsyncadd (!%p1272_p5), %s910_s22, 4294966272  ;;  %s18_s20 = sadd.s32 1, %s1443_s20   ;;  %s1659_s15 = smov %s1427_s16 }
 0x244   : > { %p15_p6 = scmp.ge.s32.totalorder %s18_s20, 4   ;;  %s1660_s16 = smov %s1431_s17 }
 0x245   : > { %s1661_s17 = smov %s1529_s28  ;;  %s1662_s18 = smov %s1439_s19 }
 0x246   : > { %s1663_s19 = smov %s1665_s23  ;;  %17 = sbr.rel (!%p15_p6) target bundleno = 5 (0x5), region = 76 }
 0x24d   :  { %915 = vsyncpa [#allocation3], 1 }
 0x24e   :  { %917 = vsyncpa [#allocation3 + $0x1], 1 }
 0x24f   :  { %918 = vsyncpa [#allocation4], 1 }
 0x250   :  { %920 = vsyncpa [#allocation4 + $0x1], 1 }

</bundles_post_ra>
